<compile_context>
chip_gen: v5e
topology: v5e:2x2
jax: 0.10.0
libtpu: 0.0.40
codegen_flags: <defaults>
</compile_context>

<pallas_src>
import functools

import jax
import jax.numpy as jnp
import numpy as np
from jax import lax
from jax.experimental import pallas as pl
from jax.experimental.pallas import tpu as pltpu

BN_EPS = 1e-3
TILE_M = 1024           # rows per grid step for the conv GEMM / normalize passes
LIN_TILE_K = 4096       # contraction tile for the fused linear layers
LIN_TILE_N = 128        # output-column tile for the fused linear layers
VMEM_LIMIT = 32 * 1024 * 1024


def _round_up(x, m):
    return (x + m - 1) // m * m


def _pad_k(kdim):
    # Lane dim of the patch stream.  Full-array (non-128) lane dims are legal
    # block shapes, so only round small K (conv1: 27) up to the packing granule
    # instead of blowing the largest patch stream up ~5x to 128.
    return _round_up(kdim, 128) if kdim >= 128 else _round_up(kdim, 8)


def _elu(z):
    # ELU(alpha=1); expm1 on the clamped branch matches torch and stays finite.
    return jnp.where(z > 0.0, z, jnp.expm1(jnp.minimum(z, 0.0)))


# ----------------------------------------------------------------------------
# Kernels
# ----------------------------------------------------------------------------
def _conv_gemm_stats_kernel(p_ref, w_ref, y_ref, sum_ref, ssq_ref):
    """Tiled conv-as-GEMM; emits bf16 pre-BN tile + per-tile channel stats.

    p_ref: (TILE_M, kpad) bf16, w_ref: (kpad, cpad) bf16,
    y_ref: (TILE_M, cpad) bf16 pre-BN conv output tile,
    sum_ref/ssq_ref: (1, 1, cpad) f32 per-tile partial statistics.
    No cross-grid state, so the M axis is safe to mark "parallel".
    """
    y = jnp.dot(p_ref[...], w_ref[...], preferred_element_type=jnp.float32)
    y_ref[...] = y.astype(y_ref.dtype)
    sum_ref[...] = jnp.sum(y, axis=0, keepdims=True)[None]
    ssq_ref[...] = jnp.sum(y * y, axis=0, keepdims=True)[None]


def _bn_act_kernel(y_ref, s1_ref, s2_ref, g_ref, bt_ref, o_ref, *, inv_m, use_elu):
    """Mem-bound BN epilogue: fold (mean,var)->(a,b) on-chip, z = y*a + b (+ELU)."""
    mean = s1_ref[...] * inv_m
    var = s2_ref[...] * inv_m - mean * mean
    a = g_ref[...] * lax.rsqrt(var + BN_EPS)
    b = bt_ref[...] - mean * a
    z = y_ref[...].astype(jnp.float32) * a + b
    if use_elu:
        z = _elu(z)
    o_ref[...] = z.astype(o_ref.dtype)


def _linear_bn_act_kernel(x_ref, w_ref, g_ref, bt_ref, o_ref, acc_ref, *,
                          inv_m, use_elu):
    """Fused Linear(bias=False) -> BatchNorm1d(batch stats) -> optional ELU.

    2-D grid: axis 0 = independent 128-wide output-column tiles ("parallel"),
    axis 1 = K contraction ("arbitrary") with an f32 VMEM accumulator.  BN +
    activation are applied at the last K step.  Padded batch rows are all-zero,
    so dividing by the real batch size (inv_m) gives exact batch statistics.
    """
    k = pl.program_id(1)

    @pl.when(k == 0)
    def _():
        acc_ref[...] = jnp.zeros_like(acc_ref)

    acc_ref[...] += jnp.dot(x_ref[...], w_ref[...],
                            preferred_element_type=jnp.float32)

    @pl.when(k == pl.num_programs(1) - 1)
    def _():
        y = acc_ref[...]
        mean = jnp.sum(y, axis=0, keepdims=True) * inv_m
        var = jnp.sum(y * y, axis=0, keepdims=True) * inv_m - mean * mean
        a = g_ref[...] * lax.rsqrt(var + BN_EPS)
        b = bt_ref[...] - mean * a
        z = y * a + b
        if use_elu:
            z = _elu(z)
        o_ref[...] = z


# ----------------------------------------------------------------------------
# Wrappers
# ----------------------------------------------------------------------------
def _im2col_3d(x_ndhwc, k, stride):
    """(N,D,H,W,Cin) -> (N*Do*Ho*Wo, k^3*Cin), patch K-order = (kd, kh, kw, cin)."""
    n, d, h, w, cin = x_ndhwc.shape
    do = (d - k) // stride + 1
    ho = (h - k) // stride + 1
    wo = (w - k) // stride + 1
    taps = []
    for dz in range(k):
        for dy in range(k):
            for dx in range(k):
                taps.append(x_ndhwc[:, dz:dz + do * stride:stride,
                                       dy:dy + ho * stride:stride,
                                       dx:dx + wo * stride:stride, :])
    patches = jnp.stack(taps, axis=-2)                   # (N,Do,Ho,Wo,k^3,Cin)
    return patches.reshape(n * do * ho * wo, k * k * k * cin), (n, do, ho, wo)


def conv3_bn_elu(x_ndhwc, w_oidhw, gamma, beta, *, stride, pad):
    """Conv3Layer forward (channels-last in/out, bf16 activations), ELU."""
    n, _, _, _, cin = x_ndhwc.shape
    cout, cin_w, k, _, _ = w_oidhw.shape
    assert cin == cin_w

    x = x_ndhwc.astype(jnp.bfloat16)                     # bf16 MXU operand
    if pad:
        x = jnp.pad(x, ((0, 0), (pad, pad), (pad, pad), (pad, pad), (0, 0)))
    patches, (n_, do, ho, wo) = _im2col_3d(x, k, stride)
    m, kdim = patches.shape
    kpad = _pad_k(kdim)
    cpad = _round_up(cout, 128)
    tiles = pl.cdiv(m, TILE_M)
    mpad = tiles * TILE_M

    patches = jnp.pad(patches, ((0, mpad - m), (0, kpad - kdim)))
    w2d = jnp.transpose(w_oidhw, (2, 3, 4, 1, 0)).reshape(kdim, cout)
    w2d = jnp.pad(w2d, ((0, kpad - kdim), (0, cpad - cout))).astype(jnp.bfloat16)
    gamma_p = jnp.pad(gamma.astype(jnp.float32), (0, cpad - cout)).reshape(1, cpad)
    beta_p = jnp.pad(beta.astype(jnp.float32), (0, cpad - cout)).reshape(1, cpad)

    # Pass 1: fully parallel tiled GEMM (the conv) + per-tile partial stats.
    y, s1p, s2p = pl.pallas_call(
        _conv_gemm_stats_kernel,
        out_shape=(jax.ShapeDtypeStruct((mpad, cpad), jnp.bfloat16),
                   jax.ShapeDtypeStruct((tiles, 1, cpad), jnp.float32),
                   jax.ShapeDtypeStruct((tiles, 1, cpad), jnp.float32)),
        grid_spec=pltpu.PrefetchScalarGridSpec(
            num_scalar_prefetch=0,
            grid=(tiles,),
            in_specs=[pl.BlockSpec((TILE_M, kpad), lambda i: (i, 0)),
                      pl.BlockSpec((kpad, cpad), lambda i: (0, 0))],
            out_specs=(pl.BlockSpec((TILE_M, cpad), lambda i: (i, 0)),
                       pl.BlockSpec((1, 1, cpad), lambda i: (i, 0, 0)),
                       pl.BlockSpec((1, 1, cpad), lambda i: (i, 0, 0)))),
        compiler_params=pltpu.CompilerParams(
            dimension_semantics=("parallel",),           # no cross-step state
            vmem_limit_bytes=VMEM_LIMIT),
        cost_estimate=pl.CostEstimate(
            flops=2 * mpad * kpad * cpad, transcendentals=0,
            bytes_accessed=(mpad * kpad + kpad * cpad + mpad * cpad) * 2
                           + 2 * tiles * cpad * 4),
    )(patches, w2d)

    # Tiny reduce of the per-tile partials (padded rows are zero => exact stats).
    s1 = jnp.sum(s1p, axis=0)                            # (1, cpad)
    s2 = jnp.sum(s2p, axis=0)

    # Pass 2: mem-bound BN(+ELU) with the a/b fold done in-kernel, parallel M.
    out = pl.pallas_call(
        functools.partial(_bn_act_kernel, inv_m=1.0 / float(m), use_elu=True),
        out_shape=jax.ShapeDtypeStruct((mpad, cpad), jnp.bfloat16),
        grid_spec=pltpu.PrefetchScalarGridSpec(
            num_scalar_prefetch=0,
            grid=(tiles,),
            in_specs=[pl.BlockSpec((TILE_M, cpad), lambda i: (i, 0)),
                      pl.BlockSpec((1, cpad), lambda i: (0, 0)),
                      pl.BlockSpec((1, cpad), lambda i: (0, 0)),
                      pl.BlockSpec((1, cpad), lambda i: (0, 0)),
                      pl.BlockSpec((1, cpad), lambda i: (0, 0))],
            out_specs=pl.BlockSpec((TILE_M, cpad), lambda i: (i, 0))),
        compiler_params=pltpu.CompilerParams(
            dimension_semantics=("parallel",),
            vmem_limit_bytes=VMEM_LIMIT),
        cost_estimate=pl.CostEstimate(
            flops=2 * mpad * cpad, transcendentals=mpad * cpad,
            bytes_accessed=2 * mpad * cpad * 2),
    )(y, s1, s2, gamma_p, beta_p)

    return out[:m, :cout].reshape(n_, do, ho, wo, cout)


def linear_bn_act(x, w_oi, gamma, beta, *, use_elu):
    """Linear(bias=False) -> BatchNorm1d(batch stats, eps=1e-3) -> optional ELU."""
    m, kdim = x.shape
    nout, kdim_w = w_oi.shape
    assert kdim == kdim_w
    mpad = _round_up(m, 8)
    npad = _round_up(nout, LIN_TILE_N)
    ntiles = npad // LIN_TILE_N
    tk = min(LIN_TILE_K, _round_up(kdim, 128))
    kpad = _round_up(kdim, tk)
    ktiles = kpad // tk

    xp = jnp.pad(x.astype(jnp.bfloat16), ((0, mpad - m), (0, kpad - kdim)))
    wp = jnp.pad(jnp.transpose(w_oi),
                 ((0, kpad - kdim), (0, npad - nout))).astype(jnp.bfloat16)
    gp = jnp.pad(gamma.astype(jnp.float32), (0, npad - nout)).reshape(1, npad)
    bp = jnp.pad(beta.astype(jnp.float32), (0, npad - nout)).reshape(1, npad)

    out = pl.pallas_call(
        functools.partial(_linear_bn_act_kernel, inv_m=1.0 / float(m),
                          use_elu=use_elu),
        out_shape=jax.ShapeDtypeStruct((mpad, npad), jnp.float32),
        grid_spec=pltpu.PrefetchScalarGridSpec(
            num_scalar_prefetch=0,
            grid=(ntiles, ktiles),
            in_specs=[pl.BlockSpec((mpad, tk), lambda nt, kt: (0, kt)),
                      pl.BlockSpec((tk, LIN_TILE_N), lambda nt, kt: (kt, nt)),
                      pl.BlockSpec((1, LIN_TILE_N), lambda nt, kt: (0, nt)),
                      pl.BlockSpec((1, LIN_TILE_N), lambda nt, kt: (0, nt))],
            out_specs=pl.BlockSpec((mpad, LIN_TILE_N), lambda nt, kt: (0, nt)),
            scratch_shapes=[pltpu.VMEM((mpad, LIN_TILE_N), jnp.float32)]),
        compiler_params=pltpu.CompilerParams(
            dimension_semantics=("parallel", "arbitrary"),   # N cols independent
            vmem_limit_bytes=VMEM_LIMIT),
        cost_estimate=pl.CostEstimate(
            flops=2 * mpad * kpad * npad, transcendentals=0,
            bytes_accessed=ntiles * mpad * kpad * 2 + kpad * npad * 2
                           + mpad * npad * 4),
    )(xp, wp, gp, bp)
    return out[:m, :nout]


@jax.jit
def encoder_forward(x_ncdhw, params):
    """Encoder.forward: 4x Conv3Layer(ELU) -> flatten -> dense -> (mu, logsigma)."""
    x = jnp.transpose(x_ncdhw, (0, 2, 3, 4, 1)).astype(jnp.float32)   # -> NDHWC
    x = conv3_bn_elu(x, params["w1"], params["g1"], params["b1"], stride=1, pad=0)
    x = conv3_bn_elu(x, params["w2"], params["g2"], params["b2"], stride=2, pad=1)
    x = conv3_bn_elu(x, params["w3"], params["g3"], params["b3"], stride=1, pad=0)
    x = conv3_bn_elu(x, params["w4"], params["g4"], params["b4"], stride=2, pad=1)
    n = x.shape[0]
    flat = jnp.transpose(x, (0, 4, 1, 2, 3)).reshape(n, -1)  # torch .view order (C,D,H,W)
    h = linear_bn_act(flat, params["wd"], params["gd"], params["bd"], use_elu=True)
    # mu / logsigma heads are fused into one kernel call (BatchNorm1d is
    # per-column, so concatenating the output dims is exact) and split after.
    n_mu = params["wmu"].shape[0]
    w_heads = jnp.concatenate([params["wmu"], params["wls"]], axis=0)
    g_heads = jnp.concatenate([params["gmu"], params["gls"]], axis=0)
    b_heads = jnp.concatenate([params["bmu"], params["bls"]], axis=0)
    heads = linear_bn_act(h, w_heads, g_heads, b_heads, use_elu=False)
    return heads[:, :n_mu], heads[:, n_mu:]


# ----------------------------------------------------------------------------
# Plain-JAX references (bf16 contraction inputs to mirror the kernels)
# ----------------------------------------------------------------------------
def _ref_conv_bn_elu(x_ncdhw, w_oidhw, gamma, beta, stride, pad):
    y = lax.conv_general_dilated(
        x_ncdhw.astype(jnp.bfloat16), w_oidhw.astype(jnp.bfloat16),
        window_strides=(stride,) * 3, padding=[(pad, pad)] * 3,
        dimension_numbers=("NCDHW", "OIDHW", "NCDHW"),
        preferred_element_type=jnp.float32)
    mean = jnp.mean(y, axis=(0, 2, 3, 4), keepdims=True)
    var = jnp.mean((y - mean) ** 2, axis=(0, 2, 3, 4), keepdims=True)
    z = (y - mean) * lax.rsqrt(var + BN_EPS)
    z = z * gamma.reshape(1, -1, 1, 1, 1) + beta.reshape(1, -1, 1, 1, 1)
    return jnp.where(z > 0, z, jnp.expm1(z))


def _ref_linear_bn_act(x, w_oi, gamma, beta, use_elu):
    y = jnp.dot(x.astype(jnp.bfloat16), jnp.transpose(w_oi).astype(jnp.bfloat16),
                preferred_element_type=jnp.float32)
    mean = jnp.mean(y, axis=0, keepdims=True)
    var = jnp.mean((y - mean) ** 2, axis=0, keepdims=True)
    z = (y - mean) * lax.rsqrt(var + BN_EPS) * gamma.reshape(1, -1) + beta.reshape(1, -1)
    if use_elu:
        z = jnp.where(z > 0, z, jnp.expm1(z))
    return z


def _ref_encoder(x, p):
    # Mirror the kernel's bf16 inter-layer activation storage so the batch-2
    # BatchNorm amplification does not blow up an otherwise-matching comparison.
    h = _ref_conv_bn_elu(x, p["w1"], p["g1"], p["b1"], 1, 0).astype(jnp.bfloat16)
    h = _ref_conv_bn_elu(h, p["w2"], p["g2"], p["b2"], 2, 1).astype(jnp.bfloat16)
    h = _ref_conv_bn_elu(h, p["w3"], p["g3"], p["b3"], 1, 0).astype(jnp.bfloat16)
    h = _ref_conv_bn_elu(h, p["w4"], p["g4"], p["b4"], 2, 1).astype(jnp.bfloat16)
    flat = h.reshape(h.shape[0], -1).astype(jnp.float32)
    h = _ref_linear_bn_act(flat, p["wd"], p["gd"], p["bd"], True)
    mu = _ref_linear_bn_act(h, p["wmu"], p["gmu"], p["bmu"], False)
    ls = _ref_linear_bn_act(h, p["wls"], p["gls"], p["bls"], False)
    return mu, ls


if __name__ == "__main__":
    key = jax.random.PRNGKey(0)
    keys = jax.random.split(key, 10)

    # ---- unit checks of the two Pallas kernels (identical bf16 inputs => tight) ----
    # Conv3Layer kernel, multi-M-tile path (partial-stats reduce): 8 -> 16 ch, stride 2.
    xc = jax.random.normal(keys[0], (2, 8, 24, 24, 24), dtype=jnp.float32)
    wc = jax.random.normal(keys[1], (16, 8, 3, 3, 3), dtype=jnp.float32) * 0.1
    gc = 1.0 + 0.1 * jax.random.normal(keys[2], (16,), dtype=jnp.float32)
    bc = 0.1 * jax.random.normal(keys[3], (16,), dtype=jnp.float32)
    got = conv3_bn_elu(jnp.transpose(xc, (0, 2, 3, 4, 1)), wc, gc, bc, stride=2, pad=1)
    got = jnp.transpose(got, (0, 4, 1, 2, 3)).astype(jnp.float32)
    ref = _ref_conv_bn_elu(xc, wc, gc, bc, stride=2, pad=1)
    np.testing.assert_allclose(np.asarray(got), np.asarray(ref), atol=2e-2, rtol=2e-2)

    # Fused Linear+BN(+ELU) kernel, multi-N-tile and multi-K-tile path.
    xl = jax.random.normal(keys[4], (2, 9000), dtype=jnp.float32)
    wl = jax.random.normal(keys[5], (343, 9000), dtype=jnp.float32) * 0.03
    gl = 1.0 + 0.1 * jax.random.normal(keys[6], (343,), dtype=jnp.float32)
    bl = 0.1 * jax.random.normal(keys[7], (343,), dtype=jnp.float32)
    got = linear_bn_act(xl, wl, gl, bl, use_elu=True)
    ref = _ref_linear_bn_act(xl, wl, gl, bl, True)
    np.testing.assert_allclose(np.asarray(got), np.asarray(ref), atol=2e-2, rtol=2e-2)

    # ---- full Encoder forward: input (N, 1, 32, 32, 32) -> (mu, logsigma) ----
    N, NUM_LATENTS = 2, 100
    x = jax.random.normal(keys[8], (N, 1, 32, 32, 32), dtype=jnp.float32)

    def conv_init(k, cout, cin):
        return jax.random.normal(k, (cout, cin, 3, 3, 3), dtype=jnp.float32) * (
            1.0 / np.sqrt(cin * 27))

    pkeys = jax.random.split(keys[9], 7)
    params = dict(
        w1=conv_init(pkeys[0], 8, 1), g1=jnp.ones((8,)), b1=jnp.zeros((8,)),
        w2=conv_init(pkeys[1], 16, 8), g2=jnp.ones((16,)), b2=jnp.zeros((16,)),
        w3=conv_init(pkeys[2], 32, 16), g3=jnp.ones((32,)), b3=jnp.zeros((32,)),
        w4=conv_init(pkeys[3], 64, 32), g4=jnp.ones((64,)), b4=jnp.zeros((64,)),
        wd=jax.random.normal(pkeys[4], (343, 7 ** 3 * 64), dtype=jnp.float32)
            * (1.0 / np.sqrt(7 ** 3 * 64)),
        gd=jnp.ones((343,)), bd=jnp.zeros((343,)),
        wmu=jax.random.normal(pkeys[5], (NUM_LATENTS, 343), dtype=jnp.float32)
            * (1.0 / np.sqrt(343)),
        gmu=jnp.ones((NUM_LATENTS,)), bmu=jnp.zeros((NUM_LATENTS,)),
        wls=jax.random.normal(pkeys[6], (NUM_LATENTS, 343), dtype=jnp.float32)
            * (1.0 / np.sqrt(343)),
        gls=jnp.ones((NUM_LATENTS,)), bls=jnp.zeros((NUM_LATENTS,)),
    )

    mu, logsigma = encoder_forward(x, params)
    mu, logsigma = jax.block_until_ready((mu, logsigma))
    assert mu.shape == (N, NUM_LATENTS) and logsigma.shape == (N, NUM_LATENTS)
    assert bool(jnp.all(jnp.isfinite(mu))) and bool(jnp.all(jnp.isfinite(logsigma)))

    # End-to-end sanity check.  bf16 MXU operands plus batch-size-2 BatchNorm make a
    # tight elementwise end-to-end comparison ill-conditioned (1/sqrt(eps) error
    # amplification on near-degenerate features), so use a loose relative-norm
    # criterion here; the per-kernel checks above are the tight ones.
    mu_r, ls_r = _ref_encoder(x, params)
    num = jnp.linalg.norm(jnp.concatenate([mu - mu_r, logsigma - ls_r], axis=1))
    den = jnp.linalg.norm(jnp.concatenate([mu_r, ls_r], axis=1))
    assert float(num) < 0.4 * float(den)

    print("KERNEL_OK")
</pallas_src>

<mosaic_0001>
module attributes {stable_mosaic.version = 11 : i64} {
  func.func @_conv_gemm_stats_kernel(%arg0: i32, %arg1: memref<1024x256xbf16, #tpu.memory_space<vmem>>, %arg2: memref<256x128xbf16, #tpu.memory_space<vmem>>, %arg3: memref<1024x128xbf16, #tpu.memory_space<vmem>>, %arg4: memref<1x1x128xf32, #tpu.memory_space<vmem>>, %arg5: memref<1x1x128xf32, #tpu.memory_space<vmem>>) attributes {dimension_semantics = [#tpu.dimension_semantics<parallel>], iteration_bounds = array<i64: 4>, scalar_prefetch = 0 : i64, scratch_operands = 0 : i64, tpu.core_type = #tpu.core_type<tc>, window_params = [{transform_indices = @transform_0, window_bounds = array<i64: 1024, 256>}, {pipeline_mode = #tpu.pipeline_mode<synchronous>, transform_indices = @transform_1, window_bounds = array<i64: 256, 128>}, {transform_indices = @transform_2, window_bounds = array<i64: 1024, 128>}, {transform_indices = @transform_3, window_bounds = array<i64: 1, 1, 128>}, {transform_indices = @transform_4, window_bounds = array<i64: 1, 1, 128>}]} {
    %c0 = arith.constant 0 : index
    %c0_0 = arith.constant 0 : index
    %0 = vector.load %arg1[%c0, %c0_0] : memref<1024x256xbf16, #tpu.memory_space<vmem>>, vector<1024x256xbf16>
    %c0_1 = arith.constant 0 : index
    %c0_2 = arith.constant 0 : index
    %1 = vector.load %arg2[%c0_1, %c0_2] : memref<256x128xbf16, #tpu.memory_space<vmem>>, vector<256x128xbf16>
    %cst = arith.constant dense<0.000000e+00> : vector<1024x128xf32>
    %2 = tpu.matmul %0, %1, %cst {dimension_numbers = #tpu.dot_dimension_numbers<[1], [0], [0], [1], [0, 0, 1, 1], [], []>} : vector<1024x256xbf16>, vector<256x128xbf16>, vector<1024x128xf32> -> vector<1024x128xf32>
    %3 = arith.truncf %2 : vector<1024x128xf32> to vector<1024x128xbf16>
    %c0_3 = arith.constant 0 : index
    %c0_4 = arith.constant 0 : index
    %4 = vector.load %arg3[%c0_3, %c0_4] : memref<1024x128xbf16, #tpu.memory_space<vmem>>, vector<1024x128xbf16>
    tpu.vector_store %arg3[%c0_3, %c0_4], %3 {strides = array<i32>} : memref<1024x128xbf16, #tpu.memory_space<vmem>>, vector<1024x128xbf16>,
    %cst_5 = arith.constant dense<0.000000e+00> : vector<128xf32>
    %5 = vector.multi_reduction <add>, %2, %cst_5 [0] : vector<1024x128xf32> to vector<128xf32>
    %6 = vector.shape_cast %5 : vector<128xf32> to vector<1x128xf32>
    %7 = vector.shape_cast %6 : vector<1x128xf32> to vector<1x1x128xf32>
    %c0_6 = arith.constant 0 : index
    %c0_7 = arith.constant 0 : index
    %c0_8 = arith.constant 0 : index
    %8 = vector.load %arg4[%c0_6, %c0_7, %c0_8] : memref<1x1x128xf32, #tpu.memory_space<vmem>>, vector<1x1x128xf32>
    tpu.vector_store %arg4[%c0_6, %c0_7, %c0_8], %7 {strides = array<i32>} : memref<1x1x128xf32, #tpu.memory_space<vmem>>, vector<1x1x128xf32>,
    %9 = arith.mulf %2, %2 : vector<1024x128xf32>
    %cst_9 = arith.constant dense<0.000000e+00> : vector<128xf32>
    %10 = vector.multi_reduction <add>, %9, %cst_9 [0] : vector<1024x128xf32> to vector<128xf32>
    %11 = vector.shape_cast %10 : vector<128xf32> to vector<1x128xf32>
    %12 = vector.shape_cast %11 : vector<1x128xf32> to vector<1x1x128xf32>
    %c0_10 = arith.constant 0 : index
    %c0_11 = arith.constant 0 : index
    %c0_12 = arith.constant 0 : index
    %13 = vector.load %arg5[%c0_10, %c0_11, %c0_12] : memref<1x1x128xf32, #tpu.memory_space<vmem>>, vector<1x1x128xf32>
    tpu.vector_store %arg5[%c0_10, %c0_11, %c0_12], %12 {strides = array<i32>} : memref<1x1x128xf32, #tpu.memory_space<vmem>>, vector<1x1x128xf32>,
    return
  }
  func.func @transform_0(%arg0: i32) -> (i32, i32) {
    %c0_i32 = arith.constant 0 : i32
    %c0_i32_0 = arith.constant 0 : i32
    return %arg0, %c0_i32 : i32, i32
  }
  func.func @transform_1(%arg0: i32) -> (i32, i32) {
    %c0_i32 = arith.constant 0 : i32
    %c0_i32_0 = arith.constant 0 : i32
    %c0_i32_1 = arith.constant 0 : i32
    return %c0_i32, %c0_i32_0 : i32, i32
  }
  func.func @transform_2(%arg0: i32) -> (i32, i32) {
    %c0_i32 = arith.constant 0 : i32
    %c0_i32_0 = arith.constant 0 : i32
    return %arg0, %c0_i32 : i32, i32
  }
  func.func @transform_3(%arg0: i32) -> (i32, i32, i32) {
    %c0_i32 = arith.constant 0 : i32
    %c0_i32_0 = arith.constant 0 : i32
    %c0_i32_1 = arith.constant 0 : i32
    return %arg0, %c0_i32, %c0_i32_0 : i32, i32, i32
  }
  func.func @transform_4(%arg0: i32) -> (i32, i32, i32) {
    %c0_i32 = arith.constant 0 : i32
    %c0_i32_0 = arith.constant 0 : i32
    %c0_i32_1 = arith.constant 0 : i32
    return %arg0, %c0_i32, %c0_i32_0 : i32, i32, i32
  }
}

</mosaic_0001>

<bundles_post_ra>
// kernel: tpu_custom_call.1
= control target key start
LH: loop header
LB: loop body
LE: loop exit
PB: predicated region body
PF: predicated region fallthrough
CT: control target
= control target key end

     0   :  { %10 = vsyncpa [#allocation3], 0  ;;  %s5016_s0 = inlined_call_operand.hbm [shape: bf16[4096,256], index: 0, kind: input, shape index: {}]   ;;  %s5017_s1 = inlined_call_operand.hbm [shape: bf16[256,128], index: 1, kind: input, shape index: {}]   ;;  %s5018_s2 = inlined_call_operand.hbm [shape: bf16[4096,128], index: 2, kind: output, shape index: {0}]   ;;  %s5019_s3 = inlined_call_operand.hbm [shape: f32[4,1,128], index: 3, kind: output, shape index: {1}]   ;;  %s5020_s4 = inlined_call_operand.hbm [shape: f32[4,1,128], index: 4, kind: output, shape index: {2}]  }
   0x1   :  { %12 = vsyncpa [#allocation3 + $0x1], 0 }
   0x2   :  { %13 = vsyncpa [#allocation6], 0 }
   0x3   :  { %14 = vsyncpa [#allocation4], 0 }
   0x4   :  { %16 = vsyncpa [#allocation4 + $0x1], 0 }
   0x5   :  { %17 = vsyncpa [#allocation9], 0 }
   0x6   :  { %19 = vsyncpa [#allocation9 + $0x1], 0  ;;  %s4082_s15 = smov 0   ;;  %s4084_s16 = smov 0  }
   0x7   :  { %s4086_s17 = smov 0   ;;  %s4088_s18 = smov 0  }
   0x8 LB: > { %s4103_s19 = sadd.s32 4294967295, %s4048_s18   ;;  %s2646_s20 = sadd.s32 4294967294, %s4048_s18   ;;  %s4048_s18 = sphi %s4088_s18, %s5093_s18   ;;  %s4044_s17 = sphi %s4086_s17, %s5092_s17   ;;  %s4040_s16 = sphi %s4084_s16, %s5091_s16   ;;  %s4036_s15 = sphi %s4082_s15, %s5090_s15  }
   0x9   : > { %p45_p0 = scmp.ne.s32.totalorder %s4040_s16, %s4036_s15  ;;  %p46_p1 = scmp.eq.s32.totalorder %s4103_s19, 0 }
   0xa   : > { %p90_p2 = scmp.eq.s32.totalorder %s4103_s19, 3  ;;  %p96_p3 = scmp.eq.s32.totalorder %s2646_s20, 3 }
   0xb   : > { %p4114_p4 = por %p46_p1, %p45_p0  ;;  %p2647_p5 = scmp.ge.s32.totalorder %s4048_s18, 1 }
   0xc   : > { %p4119_p6 = por %p96_p3, %p45_p0  ;;  %p155_p7 = scmp.lt.s32.totalorder %s4048_s18, 5 }
   0xd   : > { %s166_s25 = sshll.u32 %s5017_s1, 4  ;;  %s4050_s27 = smov [#allocation5]   ;;  %s167_s25 = int_to_ptr.hbm [resolvable:$true] %s166_s25 }
   0xe   : > { %p4127_p8 = pnand %p2647_p5, %p155_p7  ;;  %s168_s28 = sshll.u32 %s4050_s27, 4  ;;  %s169_s28 = int_to_ptr.vmem [resolvable:$true] %s168_s28 }
   0xf   : > { %s4136_s29 = sadd.s32 1, %s4048_s18   ;;  %s4051_s30 = smov 64  }
  0x10   : > { %p3797_p9 = pneg %p4127_p8  ;;  %s4052_s5 = smov 4  }
  0x11   : > { %s29_s6 = ssub.s32 %s4048_s18, %s4136_s29  ;;  %s32_s7 = sadd.s32 1, %s4044_s17 }
  0x12   : > { %p3798_p10 = pnand %p3797_p9, %p46_p1  ;;  %p30_p11 = scmp.eq.s32.totalorder %s29_s6, 0 }
  0x13   : > { %p39_p12 = scmp.ne.s32.totalorder %s4044_s17, %s4040_s16  ;;  %p40_p13 = scmp.eq.s32.totalorder %s4048_s18, 0 }
  0x14   : > { %3800 = dma.hbm_to_vmem [thread:$0]  (!%p3798_p10), %s167_s25, 2048, %s169_s28, [#allocation6], %s4051_s30, %s4051_s30, %s4052_s5  }
  0x15   : > { %p3816_p0 = scmp.lt.s32.totalorder %s4048_s18, 4  ;;  %p41_p3 = por %p40_p13, %p39_p12 }
  0x16   : > { %s4146_s8 = scalar_select %p30_p11, %s4044_s17, %s32_s7  }
  0x17   : > { %p4150_p5 = por %p90_p2, %p39_p12  ;;  %s182_s10 = sand.u32 1, %s4044_s17  }
  0x18   : > { %s3240_s11 = sshll.u32 %s4048_s18, 10  ;;  %s2650_s12 = sshll.u32 %s182_s10, 10 }
  0x19   : > { %s192_s23 = scalar_lea.hbm %s5016_s0, %s3240_s11  ;;  %s186_s25 = scalar_lea.vmem [#allocation2], %s2650_s12 }
  0x1a   : > { %s193_s24 = sshll.u32 %s192_s23, 4  ;;  %s195_s27 = sshll.u32 %s186_s25, 4  ;;  %s194_s24 = int_to_ptr.hbm [resolvable:$true] %s193_s24  ;;  %s196_s27 = int_to_ptr.vmem [resolvable:$true] %s195_s27 }
  0x1b   : > { %p4161_p7 = pnand %p3816_p0, %p41_p3  ;;  %s183_s30 = scalar_lea.sflag [#allocation3], %s182_s10 }
  0x1c   : > { %s3888_s5 = sshra.s32 %s194_s24, 4  ;;  %s3895_s12 = scalar_lea.hbm %s5016_s0, 4096  ;;  %s3889_s5 = int_to_ptr.hbm [resolvable:$true] %s3888_s5 }
  0x1d   : > { %s3890_s6 = scalar_lea.hbm %s3889_s5, 1024  ;;  %p3892_p9 = pneg %p4161_p7 }
  0x1e   : > { %p3891_p2 = scmp.ne.s32.totalorder %s3889_s5, %s3890_s6  ;;  %p3896_p12 = scmp.lt.s32.totalorder %s3889_s5, %s5016_s0 }
  0x1f   : > { %p3897_p13 = scmp.lt.s32.totalorder %s3895_s12, %s3890_s6 }
  0x20   : > { %p3893_p10 = pnand %p3892_p9, %p3891_p2 }
  0x21   : > { %p3898_p0 = por %p3897_p13, %p3896_p12 }
  0x22   : > { %p3894_p11 = pneg %p3893_p10 }
  0x24   : > { %p3899_p3 = pnand %p3898_p0, %p3894_p11 }
  0x26   : > { %3902 = shalt.err (!%p3899_p3)
}
  0x27   : > { %s4053_s10 = smov 128   ;;  %s4054_s23 = smov 8  }
  0x28   : > { %3804 = dma.hbm_to_vmem [thread:$0]  (!%p4161_p7), %s194_s24, 16384, %s196_s27, %s183_s30, %s4053_s10, %s4053_s10, %s4054_s23  }
  0x29   : > { %207 = sbr.rel (%p4127_p8) target bundleno = 875 (0x36b), region = 28 }
  0x2e   : > { %s4178_s25 = sand.u32 1, %s4040_s16  }
  0x2f   : > { %s2655_s7 = sshll.u32 %s4178_s25, 10  ;;  %s210_s5 = scalar_lea.sflag [#allocation3], %s4178_s25 }
  0x30   : > { %s4182_s6 = scalar_lea.vmem [#allocation2], %s2655_s7 }
  0x31   : > { %4019 = dma.done.wait (%p4114_p4), %s210_s5, 16384  }
  0x32   : > { %4021 = vsyncadd (%p4114_p4), %s210_s5, 4294950912 }
  0x33   : > { %4023 = dma.done.wait (%p46_p1), [#allocation6], 2048  }
  0x34   : > { %4025 = vsyncadd (%p46_p1), [#allocation6], 4294965248  ;;  %v3376_v0 = vld [vmem:[#allocation5 + $0x38] sm:$0xff]  ;;  %v3375_v2 = vld [vmem:[#allocation5 + $0x30] sm:$0xff]  ;;  %s2657_s21 = sshll.u32 %s4178_s25, 9  ;;  %s3385_s24 = sshll.u32 %s4103_s19, 9 }
  0x35   : > { %v3384_v1 = vld [vmem:[#allocation5 + $0x78] sm:$0xff]  ;;  %1150 = vmatpush.bf16.msra.mxu0 %v3376_v0  ;;  %v3383_v3 = vld [vmem:[#allocation5 + $0x70] sm:$0xff]  ;;  %3769 = vmatpush.bf16.msra.mxu2 %v3376_v0  ;;  %v3374_v4 = vld [vmem:[#allocation5 + $0x28] sm:$0xff]  ;;  %s4249_s26 = scalar_lea.vmem [#allocation7], %s2657_s21  ;;  %s2480_s30 = scalar_lea.hbm %s5018_s2, %s3385_s24 }
  0x36   : > { %1479 = vmatpush.bf16.msra.mxu1 %v3384_v1  ;;  %3777 = vmatpush.bf16.msra.mxu3 %v3384_v1  ;;  %v3382_v5 = vld [vmem:[#allocation5 + $0x68] sm:$0xff]  ;;  %v3373_v6 = vld [vmem:[#allocation5 + $0x20] sm:$0xff]  ;;  %v3372_v8 = vld [vmem:[#allocation5 + $0x18] sm:$0xff]  ;;  %s2481_s11 = sshll.u32 %s4249_s26, 4  ;;  %s2483_s12 = sshll.u32 %s2480_s30, 4  ;;  %s4871_s11 = int_to_ptr.vmem [resolvable:$true] %s2481_s11  ;;  %s2484_s12 = int_to_ptr.hbm [resolvable:$true] %s2483_s12 }
  0x37   : > { %v3381_v7 = vld [vmem:[#allocation5 + $0x60] sm:$0xff]  ;;  %v3380_v9 = vld [vmem:[#allocation5 + $0x58] sm:$0xff]  ;;  %v3371_v10 = vld [vmem:[#allocation5 + $0x10] sm:$0xff]  ;;  %s2461_s13 = scalar_lea.sflag [#allocation4], %s4178_s25  ;;  %s3932_s14 = sshra.s32 %s2484_s12, 4  ;;  %s3933_s14 = int_to_ptr.hbm [resolvable:$true] %s3932_s14 }
  0x38   : > { %v3379_v11 = vld [vmem:[#allocation5 + $0x50] sm:$0xff]  ;;  %v3370_v12 = vld [vmem:[#allocation5 + $0x8] sm:$0xff]  ;;  %v3369_v14 = vld [vmem:[#allocation5] sm:$0xff]  ;;  %s3934_s10 = scalar_lea.hbm %s3933_s14, 512  ;;  %s3938_s5 = scalar_lea.hbm %s5018_s2, 2048 }
  0x39   : > { %1151 = vmatpush.bf16.msra.mxu0 %v3375_v2  ;;  %3770 = vmatpush.bf16.msra.mxu2 %v3375_v2  ;;  %v3378_v13 = vld [vmem:[#allocation5 + $0x48] sm:$0xff]  ;;  %v3377_v15 = vld [vmem:[#allocation5 + $0x40] sm:$0xff]  ;;  %v2668_v22 = vld [vmem:[%s4182_s6 + $0x10] sm:$0xf]  ;;  %p3935_p1 = scmp.ne.s32.totalorder %s3933_s14, %s3934_s10  ;;  %p3939_p7 = scmp.lt.s32.totalorder %s3933_s14, %s5018_s2 }
  0x3a   : > { %1480 = vmatpush.bf16.msra.mxu1 %v3383_v3  ;;  %3778 = vmatpush.bf16.msra.mxu3 %v3383_v3  ;;  %v2660_v16 = vld [vmem:[%s4182_s6] sm:$0xf]  ;;  %v3242_v17 = vld [vmem:[%s4182_s6 + $0x4] sm:$0xf0]  ;;  %v3241_v18 = vld [vmem:[%s4182_s6 + $0x4] sm:$0xf]  ;;  %p3940_p2 = scmp.lt.s32.totalorder %s3938_s5, %s3934_s10 }
  0x3b   : > { %v2662_v19 = vld [vmem:[%s4182_s6 + $0x8] sm:$0xf0]  ;;  %v2661_v20 = vor.u32 %v3242_v17, %v2660_v16  ;;  %v3244_v23 = vld [vmem:[%s4182_s6 + $0x14] sm:$0xf0]  ;;  %v3243_v24 = vld [vmem:[%s4182_s6 + $0x14] sm:$0xf]  ;;  %p3936_p4 = pnand %p3935_p1, %p4150_p5 }
  0x3c   : > { %v2665_v21 = vor.u32 %v3241_v18, %v2662_v19  ;;  %v2670_v25 = vld [vmem:[%s4182_s6 + $0x18] sm:$0xf0]  ;;  %v2669_v26 = vor.u32 %v3244_v23, %v2668_v22  ;;  %v2676_v28 = vld [vmem:[%s4182_s6 + $0x20] sm:$0xf]  ;;  %v3246_v29 = vld [vmem:[%s4182_s6 + $0x24] sm:$0xf0]  ;;  %p3941_p9 = por %p3940_p2, %p3939_p7 }
  0x3d   : > { %1152 = vmatpush.bf16.msra.mxu0 %v3374_v4  ;;  %3771 = vmatpush.bf16.msra.mxu2 %v3374_v4  ;;  %v2673_v27 = vor.u32 %v3243_v24, %v2670_v25  ;;  %v3245_v30 = vld [vmem:[%s4182_s6 + $0x24] sm:$0xf]  ;;  %v2678_v31 = vld [vmem:[%s4182_s6 + $0x28] sm:$0xf0]  ;;  %v2677_v32 = vor.u32 %v3246_v29, %v2676_v28  ;;  %v2684_v34 = vld [vmem:[%s4182_s6 + $0x30] sm:$0xf]  ;;  %p3937_p8 = pneg %p3936_p4 }
  0x3e   : > { %1481 = vmatpush.bf16.msra.mxu1 %v3382_v5  ;;  %3779 = vmatpush.bf16.msra.mxu3 %v3382_v5  ;;  %v2681_v33 = vor.u32 %v3245_v30, %v2678_v31  ;;  %v3248_v35 = vld [vmem:[%s4182_s6 + $0x34] sm:$0xf0]  ;;  %v3247_v36 = vld [vmem:[%s4182_s6 + $0x34] sm:$0xf]  ;;  %v2686_v37 = vld [vmem:[%s4182_s6 + $0x38] sm:$0xf0] }
  0x3f   : > { %v2685_v38 = vor.u32 %v3248_v35, %v2684_v34  ;;  %v2689_v39 = vor.u32 %v3247_v36, %v2686_v37  ;;  %v2692_v40 = vld [vmem:[%s4182_s6 + $0x40] sm:$0xf]  ;;  %v3250_v41 = vld [vmem:[%s4182_s6 + $0x44] sm:$0xf0]  ;;  %v3249_v42 = vld [vmem:[%s4182_s6 + $0x44] sm:$0xf]  ;;  %p3942_p10 = pnand %p3941_p9, %p3937_p8 }
  0x40   : > { %v2694_v43 = vld [vmem:[%s4182_s6 + $0x48] sm:$0xf0]  ;;  %v2693_v44 = vor.u32 %v3250_v41, %v2692_v40  ;;  %v2700_v46 = vld [vmem:[%s4182_s6 + $0x50] sm:$0xf]  ;;  %v3252_v47 = vld [vmem:[%s4182_s6 + $0x54] sm:$0xf0] }
  0x41   : > { %1153 = vmatpush.bf16.msra.mxu0 %v3373_v6  ;;  %3772 = vmatpush.bf16.msra.mxu2 %v3373_v6  ;;  %v2697_v45 = vor.u32 %v3249_v42, %v2694_v43  ;;  %v3251_v48 = vld [vmem:[%s4182_s6 + $0x54] sm:$0xf]  ;;  %v2702_v49 = vld [vmem:[%s4182_s6 + $0x58] sm:$0xf0]  ;;  %v2701_v50 = vor.u32 %v3252_v47, %v2700_v46  ;;  %v2916_v52 = vld [vmem:[%s4182_s6 + $0x200] sm:$0xf] }
  0x42   : > { %1482 = vmatpush.bf16.msra.mxu1 %v3381_v7  ;;  %3780 = vmatpush.bf16.msra.mxu3 %v3381_v7  ;;  %v2705_v51 = vor.u32 %v3251_v48, %v2702_v49  ;;  %v3306_v53 = vld [vmem:[%s4182_s6 + $0x204] sm:$0xf0]  ;;  %v3305_v54 = vld [vmem:[%s4182_s6 + $0x204] sm:$0xf]  ;;  %v2918_v56 = vld [vmem:[%s4182_s6 + $0x208] sm:$0xf0] }
  0x43   : > { %v2917_v55 = vor.u32 %v3306_v53, %v2916_v52  ;;  %v2921_v57 = vor.u32 %v3305_v54, %v2918_v56  ;;  %v2708_v58 = vld [vmem:[%s4182_s6 + $0x60] sm:$0xf]  ;;  %v3254_v59 = vld [vmem:[%s4182_s6 + $0x64] sm:$0xf0]  ;;  %v3253_v60 = vld [vmem:[%s4182_s6 + $0x64] sm:$0xf] }
  0x44   : > { %v2710_v61 = vld [vmem:[%s4182_s6 + $0x68] sm:$0xf0]  ;;  %v2709_v62 = vor.u32 %v3254_v59, %v2708_v58  ;;  %v2924_v0 = vld [vmem:[%s4182_s6 + $0x210] sm:$0xf]  ;;  %v3308_v1 = vld [vmem:[%s4182_s6 + $0x214] sm:$0xf0] }
  0x45   : > { %1154 = vmatpush.bf16.msra.mxu0 %v3372_v8  ;;  %3773 = vmatpush.bf16.msra.mxu2 %v3372_v8  ;;  %v2713_v63 = vor.u32 %v3253_v60, %v2710_v61  ;;  %v3307_v2 = vld [vmem:[%s4182_s6 + $0x214] sm:$0xf]  ;;  %v2925_v3 = vor.u32 %v3308_v1, %v2924_v0  ;;  %v2926_v4 = vld [vmem:[%s4182_s6 + $0x218] sm:$0xf0]  ;;  %v2716_v6 = vld [vmem:[%s4182_s6 + $0x70] sm:$0xf] }
  0x46   : > { %1483 = vmatpush.bf16.msra.mxu1 %v3380_v9  ;;  %3781 = vmatpush.bf16.msra.mxu3 %v3380_v9  ;;  %v2929_v5 = vor.u32 %v3307_v2, %v2926_v4  ;;  %v3256_v7 = vld [vmem:[%s4182_s6 + $0x74] sm:$0xf0]  ;;  %v3255_v8 = vld [vmem:[%s4182_s6 + $0x74] sm:$0xf]  ;;  %v2718_v9 = vld [vmem:[%s4182_s6 + $0x78] sm:$0xf0] }
  0x47   : > { %v2934_v16 = vld [vmem:[%s4182_s6 + $0x228] sm:$0xf0]  ;;  %v2724_v18 = vld [vmem:[%s4182_s6 + $0x80] sm:$0xf]  ;;  %v3258_v19 = vld [vmem:[%s4182_s6 + $0x84] sm:$0xf0] }
  0x48   : > { %v2725_v22 = vor.u32 %v3258_v19, %v2724_v18  ;;  %v3311_v28 = vld [vmem:[%s4182_s6 + $0x234] sm:$0xf]  ;;  %v2942_v30 = vld [vmem:[%s4182_s6 + $0x238] sm:$0xf0]  ;;  %v2732_v40 = vld [vmem:[%s4182_s6 + $0x90] sm:$0xf] }
  0x49   : > { %1155 = vmatpush.bf16.msra.mxu0 %v3371_v10  ;;  %3774 = vmatpush.bf16.msra.mxu2 %v3371_v10  ;;  %v2717_v10 = vor.u32 %v3256_v7, %v2716_v6  ;;  %v2945_v31 = vor.u32 %v3311_v28, %v2942_v30  ;;  %v3260_v41 = vld [vmem:[%s4182_s6 + $0x94] sm:$0xf0]  ;;  %v3259_v42 = vld [vmem:[%s4182_s6 + $0x94] sm:$0xf]  ;;  %v2734_v43 = vld [vmem:[%s4182_s6 + $0x98] sm:$0xf0] }
  0x4a   : > { %1484 = vmatpush.bf16.msra.mxu1 %v3379_v11  ;;  %3782 = vmatpush.bf16.msra.mxu3 %v3379_v11  ;;  %v2721_v11 = vor.u32 %v3255_v8, %v2718_v9  ;;  %v2737_v46 = vor.u32 %v3259_v42, %v2734_v43  ;;  %v3313_v52 = vld [vmem:[%s4182_s6 + $0x244] sm:$0xf]  ;;  %v2950_v56 = vld [vmem:[%s4182_s6 + $0x248] sm:$0xf0]  ;;  %v2740_v1 = vld [vmem:[%s4182_s6 + $0xa0] sm:$0xf] }
  0x4b   : > { %v3262_v2 = vld [vmem:[%s4182_s6 + $0xa4] sm:$0xf0]  ;;  %v2742_v4 = vld [vmem:[%s4182_s6 + $0xa8] sm:$0xf0]  ;;  %v3263_v28 = vld [vmem:[%s4182_s6 + $0xb4] sm:$0xf] }
  0x4c   : > { %v2741_v6 = vor.u32 %v3262_v2, %v2740_v1  ;;  %v2966_v42 = vld [vmem:[%s4182_s6 + $0x268] sm:$0xf0] }
  0x4d   : > { %1156 = vmatpush.bf16.msra.mxu0 %v3370_v12  ;;  %3775 = vmatpush.bf16.msra.mxu2 %v3370_v12  ;;  %v2932_v12 = vld [vmem:[%s4182_s6 + $0x220] sm:$0xf] }
  0x4e   : > { %1485 = vmatpush.bf16.msra.mxu1 %v3378_v13  ;;  %3783 = vmatpush.bf16.msra.mxu3 %v3378_v13  ;;  %v3310_v13 = vld [vmem:[%s4182_s6 + $0x224] sm:$0xf0] }
  0x51   : > { %1157 = vmatpush.bf16.msra.mxu0 %v3369_v14  ;;  %3776 = vmatpush.bf16.msra.mxu2 %v3369_v14  ;;  %v3309_v14 = vld [vmem:[%s4182_s6 + $0x224] sm:$0xf] }
  0x52   : > { %1486 = vmatpush.bf16.msra.mxu1 %v3377_v15  ;;  %3784 = vmatpush.bf16.msra.mxu3 %v3377_v15  ;;  %v2933_v15 = vor.u32 %v3310_v13, %v2932_v12  ;;  %v2937_v17 = vor.u32 %v3309_v14, %v2934_v16  ;;  %v3316_v12 = vld [vmem:[%s4182_s6 + $0x254] sm:$0xf0]  ;;  %v3315_v13 = vld [vmem:[%s4182_s6 + $0x254] sm:$0xf] }
  0x54   : > { %1158 = vmatmul.bf16.vlgmr.msra.gmra.mxu0 %v2661_v20  ;;  %1318 = vmatmul.bf16.vlgmr.msra.gmra.mxu2 %v2917_v55  ;;  %v3257_v20 = vld [vmem:[%s4182_s6 + $0x84] sm:$0xf] }
  0x55   : > { %1487 = vmatmul.bf16.vlgmr.msra.gmra.mxu1 %v2665_v21  ;;  %1647 = vmatmul.bf16.vlgmr.msra.gmra.mxu3 %v2921_v57  ;;  %v2726_v21 = vld [vmem:[%s4182_s6 + $0x88] sm:$0xf0]  ;;  %v2953_v57 = vor.u32 %v3313_v52, %v2950_v56  ;;  %v3266_v52 = vld [vmem:[%s4182_s6 + $0xc4] sm:$0xf0] }
  0x56   : > { %v2729_v23 = vor.u32 %v3257_v20, %v2726_v21 }
  0x64   : > { %1163 = vmatmul.bf16.gmra.mxu0 %v2669_v26  ;;  %1323 = vmatmul.bf16.gmra.mxu2 %v2925_v3  ;;  %v2940_v26 = vld [vmem:[%s4182_s6 + $0x230] sm:$0xf]  ;;  %v3261_v3 = vld [vmem:[%s4182_s6 + $0xa4] sm:$0xf] }
  0x65   : > { %1492 = vmatmul.bf16.gmra.mxu1 %v2673_v27  ;;  %1652 = vmatmul.bf16.gmra.mxu3 %v2929_v5  ;;  %v3312_v27 = vld [vmem:[%s4182_s6 + $0x234] sm:$0xf0]  ;;  %v2745_v7 = vor.u32 %v3261_v3, %v2742_v4  ;;  %v2974_v3 = vld [vmem:[%s4182_s6 + $0x278] sm:$0xf0] }
  0x66   : > { %v2941_v29 = vor.u32 %v3312_v27, %v2940_v26  ;;  %v2748_v26 = vld [vmem:[%s4182_s6 + $0xb0] sm:$0xf]  ;;  %v3264_v27 = vld [vmem:[%s4182_s6 + $0xb4] sm:$0xf0] }
  0x74   : > { %1168 = vmatmul.bf16.gmra.mxu0 %v2677_v32  ;;  %1328 = vmatmul.bf16.gmra.mxu2 %v2933_v15 }
  0x75   : > { %1497 = vmatmul.bf16.gmra.mxu1 %v2681_v33  ;;  %1657 = vmatmul.bf16.gmra.mxu3 %v2937_v17  ;;  %v2958_v17 = vld [vmem:[%s4182_s6 + $0x258] sm:$0xf0] }
  0x76   : > { %v2961_v18 = vor.u32 %v3315_v13, %v2958_v17  ;;  %v3268_v13 = vld [vmem:[%s4182_s6 + $0xd4] sm:$0xf0] }
  0x84   : > { %1173 = vmatmul.bf16.gmra.mxu0 %v2685_v38  ;;  %1333 = vmatmul.bf16.gmra.mxu2 %v2941_v29  ;;  %v2750_v29 = vld [vmem:[%s4182_s6 + $0xb8] sm:$0xf0] }
  0x85   : > { %1502 = vmatmul.bf16.gmra.mxu1 %v2689_v39  ;;  %1662 = vmatmul.bf16.gmra.mxu3 %v2945_v31  ;;  %v2749_v31 = vor.u32 %v3264_v27, %v2748_v26 }
  0x94   : > { %1178 = vmatmul.bf16.gmra.mxu0 %v2693_v44 }
  0x95   : > { %1507 = vmatmul.bf16.gmra.mxu1 %v2697_v45  ;;  %v2733_v45 = vor.u32 %v3260_v41, %v2732_v40  ;;  %1667 = vmatmul.bf16.gmra.mxu3 %v2953_v57 }
  0xa4   : > { %1183 = vmatmul.bf16.gmra.mxu0 %v2701_v50  ;;  %v2948_v50 = vld [vmem:[%s4182_s6 + $0x240] sm:$0xf] }
  0xa5   : > { %1512 = vmatmul.bf16.gmra.mxu1 %v2705_v51  ;;  %v3314_v51 = vld [vmem:[%s4182_s6 + $0x244] sm:$0xf0]  ;;  %1672 = vmatmul.bf16.gmra.mxu3 %v2961_v18 }
  0xa6   : > { %v2949_v55 = vor.u32 %v3314_v51, %v2948_v50  ;;  %v2756_v51 = vld [vmem:[%s4182_s6 + $0xc0] sm:$0xf] }
  0xa7   : > { %v2757_v56 = vor.u32 %v3266_v52, %v2756_v51 }
  0xa8   : > { %1338 = vmatmul.bf16.gmra.mxu2 %v2949_v55 }
  0xb4   : > { %1188 = vmatmul.bf16.gmra.mxu0 %v2709_v62 }
  0xb5   : > { %1517 = vmatmul.bf16.gmra.mxu1 %v2713_v63 }
  0xc4   : > { %1193 = vmatmul.bf16.gmra.mxu0 %v2717_v10 }
  0xc5   : > { %1522 = vmatmul.bf16.gmra.mxu1 %v2721_v11  ;;  %v2956_v11 = vld [vmem:[%s4182_s6 + $0x250] sm:$0xf] }
  0xc6   : > { %v2957_v16 = vor.u32 %v3316_v12, %v2956_v11  ;;  %v2764_v12 = vld [vmem:[%s4182_s6 + $0xd0] sm:$0xf] }
  0xc7   : > { %v2765_v17 = vor.u32 %v3268_v13, %v2764_v12 }
  0xc8   : > { %1343 = vmatmul.bf16.gmra.mxu2 %v2957_v16 }
  0xd1   : > { %v1159_v24 = vpop.f32.mrf.mxu0 }
  0xd2   : > { %v1488_v25 = vpop.f32.mrf.mxu1 }
  0xd3   : > { %v1489_v32 = vadd.f32 %v1488_v25, %v1159_v24 }
  0xd4   : > { %1198 = vmatmul.bf16.gmra.mxu0 %v2725_v22 }
  0xd5   : > { %1527 = vmatmul.bf16.gmra.mxu1 %v2729_v23  ;;  %v2198_v36 = vmul.f32 %v1489_v32, %v1489_v32 }
  0xd9   : > { %v1161_v33 = vpop.f32.mrf.mxu0 }
  0xda   : > { %v1490_v34 = vpop.f32.mrf.mxu1 }
  0xdb   : > { %v1491_v35 = vadd.f32 %v1490_v34, %v1161_v33 }
  0xdd   : > { %v3389_v37 = vpack.c.bf16 %v1491_v35, %v1489_v32  ;;  %v2064_v38 = vadd.f32 %v1491_v35, %v1489_v32  ;;  %v2199_v39 = vmul.f32 %v1491_v35, %v1491_v35  ;;  %v2753_v32 = vor.u32 %v3263_v28, %v2750_v29  ;;  %v2982_v28 = vld [vmem:[%s4182_s6 + $0x288] sm:$0xf0] }
  0xdf   : > { %3390 = vst [vmem:[%s4249_s26] sm:$0xff] %v3389_v37   ;;  %v2326_v44 = vadd.f32 %v2199_v39, %v2198_v36  ;;  %v2964_v36 = vld [vmem:[%s4182_s6 + $0x260] sm:$0xf]  ;;  %v3318_v37 = vld [vmem:[%s4182_s6 + $0x264] sm:$0xf0] }
  0xe0   : > { %v2965_v41 = vor.u32 %v3318_v37, %v2964_v36 }
  0xe1   : > { %v1164_v47 = vpop.f32.mrf.mxu0 }
  0xe2   : > { %v1493_v48 = vpop.f32.mrf.mxu1  ;;  %1348 = vmatmul.bf16.gmra.mxu2 %v2965_v41  ;;  %v3269_v41 = vld [vmem:[%s4182_s6 + $0xe4] sm:$0xf] }
  0xe3   : > { %v1494_v49 = vadd.f32 %v1493_v48, %v1164_v47 }
  0xe4   : > { %1203 = vmatmul.bf16.gmra.mxu0 %v2733_v45 }
  0xe5   : > { %v2065_v53 = vadd.f32 %v2064_v38, %v1494_v49  ;;  %v2200_v54 = vmul.f32 %v1494_v49, %v1494_v49  ;;  %1532 = vmatmul.bf16.gmra.mxu1 %v2737_v46  ;;  %v3317_v38 = vld [vmem:[%s4182_s6 + $0x264] sm:$0xf] }
  0xe6   : > { %v2969_v43 = vor.u32 %v3317_v38, %v2966_v42  ;;  %v2774_v42 = vld [vmem:[%s4182_s6 + $0xe8] sm:$0xf0] }
  0xe7   : > { %v2327_v58 = vadd.f32 %v2326_v44, %v2200_v54  ;;  %v2758_v54 = vld [vmem:[%s4182_s6 + $0xc8] sm:$0xf0] }
  0xe8   : > { %1677 = vmatmul.bf16.gmra.mxu3 %v2969_v43 }
  0xe9   : > { %v1166_v59 = vpop.f32.mrf.mxu0 }
  0xea   : > { %v1495_v60 = vpop.f32.mrf.mxu1 }
  0xeb   : > { %v1496_v61 = vadd.f32 %v1495_v60, %v1166_v59 }
  0xed   : > { %v3394_v62 = vpack.c.bf16 %v1496_v61, %v1494_v49  ;;  %v2066_v63 = vadd.f32 %v2065_v53, %v1496_v61  ;;  %v2201_v0 = vmul.f32 %v1496_v61, %v1496_v61  ;;  %v3265_v53 = vld [vmem:[%s4182_s6 + $0xc4] sm:$0xf]  ;;  %v2972_v61 = vld [vmem:[%s4182_s6 + $0x270] sm:$0xf] }
  0xee   : > { %v2761_v57 = vor.u32 %v3265_v53, %v2758_v54  ;;  %v2988_v53 = vld [vmem:[%s4182_s6 + $0x290] sm:$0xf]  ;;  %v3324_v54 = vld [vmem:[%s4182_s6 + $0x294] sm:$0xf0] }
  0xef   : > { %3706 = vst [vmem:[%s4249_s26 + $0x8] sm:$0xff] %v3394_v62   ;;  %v2328_v5 = vadd.f32 %v2327_v58, %v2201_v0  ;;  %v3320_v62 = vld [vmem:[%s4182_s6 + $0x274] sm:$0xf0] }
  0xf0   : > { %v2973_v2 = vor.u32 %v3320_v62, %v2972_v61 }
  0xf1   : > { %v1169_v8 = vpop.f32.mrf.mxu0 }
  0xf2   : > { %v1498_v9 = vpop.f32.mrf.mxu1  ;;  %1353 = vmatmul.bf16.gmra.mxu2 %v2973_v2 }
  0xf3   : > { %v1499_v10 = vadd.f32 %v1498_v9, %v1169_v8 }
  0xf4   : > { %1208 = vmatmul.bf16.gmra.mxu0 %v2741_v6 }
  0xf5   : > { %v2067_v14 = vadd.f32 %v2066_v63, %v1499_v10  ;;  %v2202_v15 = vmul.f32 %v1499_v10, %v1499_v10  ;;  %1537 = vmatmul.bf16.gmra.mxu1 %v2745_v7  ;;  %v3319_v63 = vld [vmem:[%s4182_s6 + $0x274] sm:$0xf] }
  0xf6   : > { %v2977_v4 = vor.u32 %v3319_v63, %v2974_v3 }
  0xf7   : > { %v2329_v19 = vadd.f32 %v2328_v5, %v2202_v15  ;;  %v2766_v15 = vld [vmem:[%s4182_s6 + $0xd8] sm:$0xf0] }
  0xf8   : > { %1682 = vmatmul.bf16.gmra.mxu3 %v2977_v4 }
  0xf9   : > { %v1171_v20 = vpop.f32.mrf.mxu0 }
  0xfa   : > { %v1500_v21 = vpop.f32.mrf.mxu1 }
  0xfb   : > { %v1501_v22 = vadd.f32 %v1500_v21, %v1171_v20 }
  0xfd   : > { %v3399_v23 = vpack.c.bf16 %v1501_v22, %v1499_v10  ;;  %v2068_v24 = vadd.f32 %v2067_v14, %v1501_v22  ;;  %v2203_v25 = vmul.f32 %v1501_v22, %v1501_v22  ;;  %v3267_v14 = vld [vmem:[%s4182_s6 + $0xd4] sm:$0xf]  ;;  %v2980_v22 = vld [vmem:[%s4182_s6 + $0x280] sm:$0xf] }
  0xfe   : > { %v2769_v18 = vor.u32 %v3267_v14, %v2766_v15 }
  0xff   : > { %3707 = vst [vmem:[%s4249_s26 + $0x10] sm:$0xff] %v3399_v23   ;;  %v2330_v30 = vadd.f32 %v2329_v19, %v2203_v25  ;;  %v3322_v23 = vld [vmem:[%s4182_s6 + $0x284] sm:$0xf0] }
 0x100   : > { %v2981_v27 = vor.u32 %v3322_v23, %v2980_v22  ;;  %v3326_v22 = vld [vmem:[%s4182_s6 + $0x2a4] sm:$0xf0]  ;;  %v3325_v23 = vld [vmem:[%s4182_s6 + $0x2a4] sm:$0xf] }
 0x101   : > { %v1174_v33 = vpop.f32.mrf.mxu0 }
 0x102   : > { %v1503_v34 = vpop.f32.mrf.mxu1  ;;  %1358 = vmatmul.bf16.gmra.mxu2 %v2981_v27  ;;  %v2998_v27 = vld [vmem:[%s4182_s6 + $0x2a8] sm:$0xf0] }
 0x103   : > { %v1504_v35 = vadd.f32 %v1503_v34, %v1174_v33  ;;  %v1319_v34 = vpop.f32.mrf.mxu2 }
 0x104   : > { %1213 = vmatmul.bf16.gmra.mxu0 %v2749_v31 }
 0x105   : > { %v2069_v39 = vadd.f32 %v2068_v24, %v1504_v35  ;;  %v2204_v40 = vmul.f32 %v1504_v35, %v1504_v35  ;;  %1542 = vmatmul.bf16.gmra.mxu1 %v2753_v32  ;;  %v3321_v24 = vld [vmem:[%s4182_s6 + $0x284] sm:$0xf] }
 0x106   : > { %v2985_v29 = vor.u32 %v3321_v24, %v2982_v28 }
 0x107   : > { %v2331_v44 = vadd.f32 %v2330_v30, %v2204_v40  ;;  %v3270_v40 = vld [vmem:[%s4182_s6 + $0xe4] sm:$0xf0] }
 0x108   : > { %1687 = vmatmul.bf16.gmra.mxu3 %v2985_v29  ;;  %v3001_v29 = vor.u32 %v3325_v23, %v2998_v27  ;;  %v3329_v27 = vld [vmem:[%s4182_s6 + $0x2c4] sm:$0xf] }
 0x109   : > { %v1176_v45 = vpop.f32.mrf.mxu0 }
 0x10a   : > { %v1505_v46 = vpop.f32.mrf.mxu1 }
 0x10b   : > { %v1506_v47 = vadd.f32 %v1505_v46, %v1176_v45  ;;  %v2777_v45 = vor.u32 %v3269_v41, %v2774_v42  ;;  %v3273_v41 = vld [vmem:[%s4182_s6 + $0x104] sm:$0xf]  ;;  %v2790_v42 = vld [vmem:[%s4182_s6 + $0x108] sm:$0xf0] }
 0x10d   : > { %v3404_v48 = vpack.c.bf16 %v1506_v47, %v1504_v35  ;;  %v2070_v49 = vadd.f32 %v2069_v39, %v1506_v47  ;;  %v2205_v50 = vmul.f32 %v1506_v47, %v1506_v47  ;;  %v1648_v35 = vpop.f32.mrf.mxu3  ;;  %v2772_v39 = vld [vmem:[%s4182_s6 + $0xe0] sm:$0xf] }
 0x10f   : > { %3708 = vst [vmem:[%s4249_s26 + $0x18] sm:$0xff] %v3404_v48   ;;  %v2332_v55 = vadd.f32 %v2331_v44, %v2205_v50  ;;  %v2773_v44 = vor.u32 %v3270_v40, %v2772_v39  ;;  %v4297_v48 = vadd.f32 %v1648_v35, %v1319_v34  ;;  %v1321_v50 = vpop.f32.mrf.mxu2  ;;  %v2788_v39 = vld [vmem:[%s4182_s6 + $0x100] sm:$0xf]  ;;  %v3274_v40 = vld [vmem:[%s4182_s6 + $0x104] sm:$0xf0] }
 0x111   : > { %v1179_v58 = vpop.f32.mrf.mxu0 }
 0x112   : > { %v1508_v59 = vpop.f32.mrf.mxu1 }
 0x113   : > { %v1509_v60 = vadd.f32 %v1508_v59, %v1179_v58  ;;  %v2989_v58 = vor.u32 %v3324_v54, %v2988_v53  ;;  %v2990_v59 = vld [vmem:[%s4182_s6 + $0x298] sm:$0xf0] }
 0x114   : > { %1218 = vmatmul.bf16.gmra.mxu0 %v2757_v56 }
 0x115   : > { %v2071_v0 = vadd.f32 %v2070_v49, %v1509_v60  ;;  %v2206_v1 = vmul.f32 %v1509_v60, %v1509_v60  ;;  %1547 = vmatmul.bf16.gmra.mxu1 %v2761_v57  ;;  %v1650_v51 = vpop.f32.mrf.mxu3  ;;  %1363 = vmatmul.bf16.gmra.mxu2 %v2989_v58 }
 0x116   : > { %v4299_v52 = vadd.f32 %v1650_v51, %v1321_v50 }
 0x117   : > { %v2333_v5 = vadd.f32 %v2332_v55, %v2206_v1  ;;  %v3323_v55 = vld [vmem:[%s4182_s6 + $0x294] sm:$0xf]  ;;  %v1324_v2 = vpop.f32.mrf.mxu2 }
 0x118   : > { %v2993_v61 = vor.u32 %v3323_v55, %v2990_v59  ;;  %v3004_v55 = vld [vmem:[%s4182_s6 + $0x2b0] sm:$0xf] }
 0x119   : > { %v1181_v6 = vpop.f32.mrf.mxu0 }
 0x11a   : > { %v1510_v7 = vpop.f32.mrf.mxu1  ;;  %1692 = vmatmul.bf16.gmra.mxu3 %v2993_v61  ;;  %v3006_v61 = vld [vmem:[%s4182_s6 + $0x2b8] sm:$0xf0] }
 0x11b   : > { %v1511_v8 = vadd.f32 %v1510_v7, %v1181_v6  ;;  %v2780_v7 = vld [vmem:[%s4182_s6 + $0xf0] sm:$0xf] }
 0x11d   : > { %v3409_v9 = vpack.c.bf16 %v1511_v8, %v1509_v60  ;;  %v2072_v10 = vadd.f32 %v2071_v0, %v1511_v8  ;;  %v2207_v11 = vmul.f32 %v1511_v8, %v1511_v8  ;;  %v3549_v60 = vpack.c.bf16 %v4299_v52, %v4297_v48  ;;  %v1653_v3 = vpop.f32.mrf.mxu3  ;;  %v3272_v8 = vld [vmem:[%s4182_s6 + $0xf4] sm:$0xf0] }
 0x11e   : > { %v2781_v12 = vor.u32 %v3272_v8, %v2780_v7 }
 0x11f   : > { %3709 = vst [vmem:[%s4249_s26 + $0x20] sm:$0xff] %v3409_v9   ;;  %v2334_v16 = vadd.f32 %v2333_v5, %v2207_v11  ;;  %v3271_v9 = vld [vmem:[%s4182_s6 + $0xf4] sm:$0xf] }
 0x120   : > { %3737 = vst [vmem:[%s4249_s26 + $0x100] sm:$0xff] %v3549_v60  }
 0x121   : > { %v1184_v19 = vpop.f32.mrf.mxu0 }
 0x122   : > { %v1513_v20 = vpop.f32.mrf.mxu1 }
 0x123   : > { %v1514_v21 = vadd.f32 %v1513_v20, %v1184_v19 }
 0x124   : > { %1223 = vmatmul.bf16.gmra.mxu0 %v2765_v17 }
 0x125   : > { %v2073_v25 = vadd.f32 %v2072_v10, %v1514_v21  ;;  %v2208_v26 = vmul.f32 %v1514_v21, %v1514_v21  ;;  %1552 = vmatmul.bf16.gmra.mxu1 %v2769_v18  ;;  %v2782_v10 = vld [vmem:[%s4182_s6 + $0xf8] sm:$0xf0]  ;;  %v1326_v18 = vpop.f32.mrf.mxu2  ;;  %v1655_v19 = vpop.f32.mrf.mxu3 }
 0x126   : > { %v2785_v13 = vor.u32 %v3271_v9, %v2782_v10  ;;  %v4315_v20 = vadd.f32 %v1655_v19, %v1326_v18  ;;  %v2796_v9 = vld [vmem:[%s4182_s6 + $0x110] sm:$0xf]  ;;  %v3276_v10 = vld [vmem:[%s4182_s6 + $0x114] sm:$0xf0] }
 0x127   : > { %v2335_v30 = vadd.f32 %v2334_v16, %v2208_v26  ;;  %v4313_v16 = vadd.f32 %v1653_v3, %v1324_v2 }
 0x129   : > { %v1186_v31 = vpop.f32.mrf.mxu0  ;;  %v3554_v28 = vpack.c.bf16 %v4315_v20, %v4313_v16 }
 0x12a   : > { %v1515_v32 = vpop.f32.mrf.mxu1  ;;  %1697 = vmatmul.bf16.gmra.mxu3 %v3001_v29 }
 0x12b   : > { %v1516_v33 = vadd.f32 %v1515_v32, %v1186_v31  ;;  %3738 = vst [vmem:[%s4249_s26 + $0x108] sm:$0xff] %v3554_v28  }
 0x12d   : > { %v3414_v36 = vpack.c.bf16 %v1516_v33, %v1514_v21  ;;  %v2074_v37 = vadd.f32 %v2073_v25, %v1516_v33  ;;  %v2209_v38 = vmul.f32 %v1516_v33, %v1516_v33  ;;  %v2996_v21 = vld [vmem:[%s4182_s6 + $0x2a0] sm:$0xf]  ;;  %v1329_v34 = vpop.f32.mrf.mxu2  ;;  %v1658_v35 = vpop.f32.mrf.mxu3 }
 0x12e   : > { %v2997_v26 = vor.u32 %v3326_v22, %v2996_v21 }
 0x12f   : > { %3710 = vst [vmem:[%s4249_s26 + $0x28] sm:$0xff] %v3414_v36   ;;  %v2336_v43 = vadd.f32 %v2335_v30, %v2209_v38 }
 0x130   : > { %1368 = vmatmul.bf16.gmra.mxu2 %v2997_v26  ;;  %v3330_v26 = vld [vmem:[%s4182_s6 + $0x2c4] sm:$0xf0] }
 0x131   : > { %v1189_v46 = vpop.f32.mrf.mxu0 }
 0x132   : > { %v1518_v47 = vpop.f32.mrf.mxu1 }
 0x133   : > { %v1519_v49 = vadd.f32 %v1518_v47, %v1189_v46 }
 0x134   : > { %1228 = vmatmul.bf16.gmra.mxu0 %v2773_v44  ;;  %v2789_v44 = vor.u32 %v3274_v40, %v2788_v39 }
 0x135   : > { %v2075_v56 = vadd.f32 %v2074_v37, %v1519_v49  ;;  %v2210_v57 = vmul.f32 %v1519_v49, %v1519_v49  ;;  %1557 = vmatmul.bf16.gmra.mxu1 %v2777_v45  ;;  %v2793_v45 = vor.u32 %v3273_v41, %v2790_v42  ;;  %v1331_v51 = vpop.f32.mrf.mxu2  ;;  %v1660_v53 = vpop.f32.mrf.mxu3 }
 0x136   : > { %v4331_v54 = vadd.f32 %v1660_v53, %v1331_v51 }
 0x137   : > { %v2337_v62 = vadd.f32 %v2336_v43, %v2210_v57  ;;  %v3327_v57 = vld [vmem:[%s4182_s6 + $0x2b4] sm:$0xf] }
 0x139   : > { %v1191_v63 = vpop.f32.mrf.mxu0 }
 0x13a   : > { %v1520_v0 = vpop.f32.mrf.mxu1 }
 0x13b   : > { %v1521_v1 = vadd.f32 %v1520_v0, %v1191_v63  ;;  %v3009_v63 = vor.u32 %v3327_v57, %v3006_v61  ;;  %v3020_v61 = vld [vmem:[%s4182_s6 + $0x2d0] sm:$0xf] }
 0x13d   : > { %v3419_v4 = vpack.c.bf16 %v1521_v1, %v1519_v49  ;;  %v2076_v5 = vadd.f32 %v2075_v56, %v1521_v1  ;;  %v2211_v6 = vmul.f32 %v1521_v1, %v1521_v1  ;;  %v4329_v49 = vadd.f32 %v1658_v35, %v1329_v34  ;;  %v3328_v56 = vld [vmem:[%s4182_s6 + $0x2b4] sm:$0xf0]  ;;  %1702 = vmatmul.bf16.gmra.mxu3 %v3009_v63  ;;  %v3331_v63 = vld [vmem:[%s4182_s6 + $0x2d4] sm:$0xf] }
 0x13e   : > { %v3005_v60 = vor.u32 %v3328_v56, %v3004_v55 }
 0x13f   : > { %3711 = vst [vmem:[%s4249_s26 + $0x30] sm:$0xff] %v3419_v4   ;;  %v2338_v11 = vadd.f32 %v2337_v62, %v2211_v6  ;;  %v3559_v62 = vpack.c.bf16 %v4331_v54, %v4329_v49  ;;  %v1334_v4 = vpop.f32.mrf.mxu2 }
 0x140   : > { %1373 = vmatmul.bf16.gmra.mxu2 %v3005_v60 }
 0x141   : > { %v1194_v14 = vpop.f32.mrf.mxu0  ;;  %3739 = vst [vmem:[%s4249_s26 + $0x110] sm:$0xff] %v3559_v62   ;;  %v3332_v62 = vld [vmem:[%s4182_s6 + $0x2d4] sm:$0xf0] }
 0x142   : > { %v1523_v15 = vpop.f32.mrf.mxu1 }
 0x143   : > { %v1524_v17 = vadd.f32 %v1523_v15, %v1194_v14  ;;  %v2797_v14 = vor.u32 %v3276_v10, %v2796_v9 }
 0x144   : > { %1233 = vmatmul.bf16.gmra.mxu0 %v2781_v12  ;;  %v2798_v12 = vld [vmem:[%s4182_s6 + $0x118] sm:$0xf0] }
 0x145   : > { %v2077_v24 = vadd.f32 %v2076_v5, %v1524_v17  ;;  %v2212_v25 = vmul.f32 %v1524_v17, %v1524_v17  ;;  %1562 = vmatmul.bf16.gmra.mxu1 %v2785_v13  ;;  %v1663_v5 = vpop.f32.mrf.mxu3 }
 0x146   : > { %v4345_v19 = vadd.f32 %v1663_v5, %v1334_v4 }
 0x147   : > { %v2339_v30 = vadd.f32 %v2338_v11, %v2212_v25  ;;  %v3275_v11 = vld [vmem:[%s4182_s6 + $0x114] sm:$0xf]  ;;  %v1336_v22 = vpop.f32.mrf.mxu2  ;;  %v3012_v25 = vld [vmem:[%s4182_s6 + $0x2c0] sm:$0xf] }
 0x148   : > { %v2801_v15 = vor.u32 %v3275_v11, %v2798_v12 }
 0x149   : > { %v1196_v31 = vpop.f32.mrf.mxu0 }
 0x14a   : > { %v1525_v32 = vpop.f32.mrf.mxu1 }
 0x14b   : > { %v1526_v33 = vadd.f32 %v1525_v32, %v1196_v31  ;;  %v3014_v31 = vld [vmem:[%s4182_s6 + $0x2c8] sm:$0xf0] }
 0x14d   : > { %v3424_v36 = vpack.c.bf16 %v1526_v33, %v1524_v17  ;;  %v2078_v37 = vadd.f32 %v2077_v24, %v1526_v33  ;;  %v2213_v38 = vmul.f32 %v1526_v33, %v1526_v33  ;;  %v1665_v23 = vpop.f32.mrf.mxu3  ;;  %v3017_v33 = vor.u32 %v3329_v27, %v3014_v31 }
 0x14e   : > { %v4347_v24 = vadd.f32 %v1665_v23, %v1336_v22 }
 0x14f   : > { %3712 = vst [vmem:[%s4249_s26 + $0x38] sm:$0xff] %v3424_v36   ;;  %v2340_v43 = vadd.f32 %v2339_v30, %v2213_v38  ;;  %v3013_v30 = vor.u32 %v3330_v26, %v3012_v25  ;;  %1707 = vmatmul.bf16.gmra.mxu3 %v3017_v33  ;;  %v1339_v38 = vpop.f32.mrf.mxu2  ;;  %v3028_v33 = vld [vmem:[%s4182_s6 + $0x2e0] sm:$0xf] }
 0x150   : > { %v3564_v32 = vpack.c.bf16 %v4347_v24, %v4345_v19 }
 0x151   : > { %v1199_v46 = vpop.f32.mrf.mxu0  ;;  %1378 = vmatmul.bf16.gmra.mxu2 %v3013_v30 }
 0x152   : > { %v1528_v47 = vpop.f32.mrf.mxu1  ;;  %3740 = vst [vmem:[%s4249_s26 + $0x118] sm:$0xff] %v3564_v32  }
 0x153   : > { %v1529_v50 = vadd.f32 %v1528_v47, %v1199_v46  ;;  %v2806_v46 = vld [vmem:[%s4182_s6 + $0x128] sm:$0xf0] }
 0x154   : > { %1238 = vmatmul.bf16.gmra.mxu0 %v2789_v44  ;;  %v3278_v44 = vld [vmem:[%s4182_s6 + $0x124] sm:$0xf0] }
 0x155   : > { %v2079_v58 = vadd.f32 %v2078_v37, %v1529_v50  ;;  %v2214_v59 = vmul.f32 %v1529_v50, %v1529_v50  ;;  %1567 = vmatmul.bf16.gmra.mxu1 %v2793_v45  ;;  %v1668_v39 = vpop.f32.mrf.mxu3  ;;  %v3277_v45 = vld [vmem:[%s4182_s6 + $0x124] sm:$0xf] }
 0x156   : > { %v2809_v51 = vor.u32 %v3277_v45, %v2806_v46  ;;  %v4361_v56 = vadd.f32 %v1668_v39, %v1339_v38  ;;  %v3030_v39 = vld [vmem:[%s4182_s6 + $0x2e8] sm:$0xf0] }
 0x157   : > { %v2341_v0 = vadd.f32 %v2340_v43, %v2214_v59  ;;  %v2804_v43 = vld [vmem:[%s4182_s6 + $0x120] sm:$0xf] }
 0x159   : > { %v1201_v1 = vpop.f32.mrf.mxu0 }
 0x15a   : > { %v1530_v2 = vpop.f32.mrf.mxu1 }
 0x15b   : > { %v1531_v3 = vadd.f32 %v1530_v2, %v1201_v1  ;;  %v3021_v2 = vor.u32 %v3332_v62, %v3020_v61 }
 0x15d   : > { %v3429_v6 = vpack.c.bf16 %v1531_v3, %v1529_v50  ;;  %v2080_v7 = vadd.f32 %v2079_v58, %v1531_v3  ;;  %v2215_v8 = vmul.f32 %v1531_v3, %v1531_v3  ;;  %v2805_v50 = vor.u32 %v3278_v44, %v2804_v43  ;;  %v1341_v58 = vpop.f32.mrf.mxu2  ;;  %v1670_v59 = vpop.f32.mrf.mxu3  ;;  %v3022_v3 = vld [vmem:[%s4182_s6 + $0x2d8] sm:$0xf0] }
 0x15e   : > { %v4363_v60 = vadd.f32 %v1670_v59, %v1341_v58  ;;  %v3025_v5 = vor.u32 %v3331_v63, %v3022_v3  ;;  %v3281_v58 = vld [vmem:[%s4182_s6 + $0x144] sm:$0xf]  ;;  %v2822_v59 = vld [vmem:[%s4182_s6 + $0x148] sm:$0xf0] }
 0x15f   : > { %3713 = vst [vmem:[%s4249_s26 + $0x40] sm:$0xff] %v3429_v6   ;;  %v2342_v13 = vadd.f32 %v2341_v0, %v2215_v8  ;;  %v2825_v63 = vor.u32 %v3281_v58, %v2822_v59 }
 0x160   : > { %v3569_v4 = vpack.c.bf16 %v4363_v60, %v4361_v56  ;;  %1712 = vmatmul.bf16.gmra.mxu3 %v3025_v5 }
 0x161   : > { %v1204_v17 = vpop.f32.mrf.mxu0  ;;  %1383 = vmatmul.bf16.gmra.mxu2 %v3021_v2 }
 0x162   : > { %v1533_v18 = vpop.f32.mrf.mxu1  ;;  %3741 = vst [vmem:[%s4249_s26 + $0x120] sm:$0xff] %v3569_v4  }
 0x163   : > { %v1534_v21 = vadd.f32 %v1533_v18, %v1204_v17  ;;  %v3280_v17 = vld [vmem:[%s4182_s6 + $0x134] sm:$0xf0]  ;;  %v3279_v18 = vld [vmem:[%s4182_s6 + $0x134] sm:$0xf] }
 0x164   : > { %1243 = vmatmul.bf16.gmra.mxu0 %v2797_v14 }
 0x165   : > { %v2081_v28 = vadd.f32 %v2080_v7, %v1534_v21  ;;  %v2216_v29 = vmul.f32 %v1534_v21, %v1534_v21  ;;  %1572 = vmatmul.bf16.gmra.mxu1 %v2801_v15  ;;  %v1344_v10 = vpop.f32.mrf.mxu2  ;;  %v1673_v11 = vpop.f32.mrf.mxu3  ;;  %v2812_v15 = vld [vmem:[%s4182_s6 + $0x130] sm:$0xf] }
 0x166   : > { %v2813_v23 = vor.u32 %v3280_v17, %v2812_v15 }
 0x167   : > { %v2343_v34 = vadd.f32 %v2342_v13, %v2216_v29 }
 0x169   : > { %v1206_v35 = vpop.f32.mrf.mxu0 }
 0x16a   : > { %v1535_v36 = vpop.f32.mrf.mxu1 }
 0x16b   : > { %v1536_v37 = vadd.f32 %v1535_v36, %v1206_v35  ;;  %v3333_v35 = vld [vmem:[%s4182_s6 + $0x2e4] sm:$0xf] }
 0x16d   : > { %v3434_v40 = vpack.c.bf16 %v1536_v37, %v1534_v21  ;;  %v2082_v41 = vadd.f32 %v2081_v28, %v1536_v37  ;;  %v2217_v42 = vmul.f32 %v1536_v37, %v1536_v37  ;;  %v2814_v21 = vld [vmem:[%s4182_s6 + $0x138] sm:$0xf0]  ;;  %v4377_v28 = vadd.f32 %v1673_v11, %v1344_v10  ;;  %v1346_v30 = vpop.f32.mrf.mxu2  ;;  %v1675_v31 = vpop.f32.mrf.mxu3 }
 0x16e   : > { %v2817_v25 = vor.u32 %v3279_v18, %v2814_v21  ;;  %v4379_v32 = vadd.f32 %v1675_v31, %v1346_v30  ;;  %v2828_v30 = vld [vmem:[%s4182_s6 + $0x150] sm:$0xf]  ;;  %v3284_v31 = vld [vmem:[%s4182_s6 + $0x154] sm:$0xf0] }
 0x16f   : > { %3714 = vst [vmem:[%s4249_s26 + $0x48] sm:$0xff] %v3434_v40   ;;  %v2344_v47 = vadd.f32 %v2343_v34, %v2217_v42  ;;  %v3334_v34 = vld [vmem:[%s4182_s6 + $0x2e4] sm:$0xf0] }
 0x170   : > { %v3029_v38 = vor.u32 %v3334_v34, %v3028_v33  ;;  %v3574_v40 = vpack.c.bf16 %v4379_v32, %v4377_v28  ;;  %v3283_v33 = vld [vmem:[%s4182_s6 + $0x154] sm:$0xf]  ;;  %v2830_v34 = vld [vmem:[%s4182_s6 + $0x158] sm:$0xf0] }
 0x171   : > { %v1209_v53 = vpop.f32.mrf.mxu0 }
 0x172   : > { %v1538_v55 = vpop.f32.mrf.mxu1  ;;  %1388 = vmatmul.bf16.gmra.mxu2 %v3029_v38  ;;  %3742 = vst [vmem:[%s4249_s26 + $0x128] sm:$0xff] %v3574_v40  }
 0x173   : > { %v1539_v57 = vadd.f32 %v1538_v55, %v1209_v53  ;;  %v2820_v55 = vld [vmem:[%s4182_s6 + $0x140] sm:$0xf] }
 0x174   : > { %1248 = vmatmul.bf16.gmra.mxu0 %v2805_v50 }
 0x175   : > { %v2083_v0 = vadd.f32 %v2082_v41, %v1539_v57  ;;  %v2218_v1 = vmul.f32 %v1539_v57, %v1539_v57  ;;  %1577 = vmatmul.bf16.gmra.mxu1 %v2809_v51  ;;  %v3033_v41 = vor.u32 %v3333_v35, %v3030_v39  ;;  %v1349_v46 = vpop.f32.mrf.mxu2 }
 0x177   : > { %v2345_v6 = vadd.f32 %v2344_v47, %v2218_v1  ;;  %1717 = vmatmul.bf16.gmra.mxu3 %v3033_v41  ;;  %v1678_v47 = vpop.f32.mrf.mxu3 }
 0x178   : > { %v4393_v2 = vadd.f32 %v1678_v47, %v1349_v46  ;;  %v3338_v46 = vld [vmem:[%s4182_s6 + $0x304] sm:$0xf0]  ;;  %v3337_v47 = vld [vmem:[%s4182_s6 + $0x304] sm:$0xf] }
 0x179   : > { %v1211_v7 = vpop.f32.mrf.mxu0 }
 0x17a   : > { %v1540_v8 = vpop.f32.mrf.mxu1 }
 0x17b   : > { %v1541_v9 = vadd.f32 %v1540_v8, %v1211_v7  ;;  %v3036_v7 = vld [vmem:[%s4182_s6 + $0x2f0] sm:$0xf]  ;;  %v3336_v8 = vld [vmem:[%s4182_s6 + $0x2f4] sm:$0xf0] }
 0x17d   : > { %v3439_v12 = vpack.c.bf16 %v1541_v9, %v1539_v57  ;;  %v2084_v13 = vadd.f32 %v2083_v0, %v1541_v9  ;;  %v2219_v14 = vmul.f32 %v1541_v9, %v1541_v9  ;;  %v3282_v57 = vld [vmem:[%s4182_s6 + $0x144] sm:$0xf0]  ;;  %v1351_v4 = vpop.f32.mrf.mxu2  ;;  %v3335_v9 = vld [vmem:[%s4182_s6 + $0x2f4] sm:$0xf] }
 0x17e   : > { %v2821_v62 = vor.u32 %v3282_v57, %v2820_v55  ;;  %v3046_v55 = vld [vmem:[%s4182_s6 + $0x308] sm:$0xf0] }
 0x17f   : > { %3715 = vst [vmem:[%s4249_s26 + $0x50] sm:$0xff] %v3439_v12   ;;  %v2346_v22 = vadd.f32 %v2345_v6, %v2219_v14  ;;  %v1680_v5 = vpop.f32.mrf.mxu3  ;;  %v3037_v12 = vor.u32 %v3336_v8, %v3036_v7  ;;  %v3049_v58 = vor.u32 %v3337_v47, %v3046_v55  ;;  %v2836_v7 = vld [vmem:[%s4182_s6 + $0x160] sm:$0xf]  ;;  %v3286_v8 = vld [vmem:[%s4182_s6 + $0x164] sm:$0xf0] }
 0x180   : > { %v4395_v6 = vadd.f32 %v1680_v5, %v1351_v4  ;;  %v2844_v47 = vld [vmem:[%s4182_s6 + $0x170] sm:$0xf] }
 0x181   : > { %v1214_v26 = vpop.f32.mrf.mxu0 }
 0x182   : > { %v1543_v27 = vpop.f32.mrf.mxu1  ;;  %v3579_v14 = vpack.c.bf16 %v4395_v6, %v4393_v2  ;;  %1393 = vmatmul.bf16.gmra.mxu2 %v3037_v12  ;;  %v2837_v12 = vor.u32 %v3286_v8, %v2836_v7  ;;  %v3341_v7 = vld [vmem:[%s4182_s6 + $0x324] sm:$0xf] }
 0x183   : > { %v1544_v29 = vadd.f32 %v1543_v27, %v1214_v26 }
 0x184   : > { %1253 = vmatmul.bf16.gmra.mxu0 %v2813_v23  ;;  %3743 = vst [vmem:[%s4249_s26 + $0x130] sm:$0xff] %v3579_v14  }
 0x185   : > { %v2085_v36 = vadd.f32 %v2084_v13, %v1544_v29  ;;  %v2220_v37 = vmul.f32 %v1544_v29, %v1544_v29  ;;  %1582 = vmatmul.bf16.gmra.mxu1 %v2817_v25  ;;  %v3038_v13 = vld [vmem:[%s4182_s6 + $0x2f8] sm:$0xf0]  ;;  %v1354_v23 = vpop.f32.mrf.mxu2 }
 0x186   : > { %v3041_v15 = vor.u32 %v3335_v9, %v3038_v13  ;;  %v3285_v9 = vld [vmem:[%s4182_s6 + $0x164] sm:$0xf] }
 0x187   : > { %v2347_v42 = vadd.f32 %v2346_v22, %v2220_v37  ;;  %v1683_v25 = vpop.f32.mrf.mxu3  ;;  %v2833_v37 = vor.u32 %v3283_v33, %v2830_v34  ;;  %v3054_v33 = vld [vmem:[%s4182_s6 + $0x318] sm:$0xf0] }
 0x188   : > { %1722 = vmatmul.bf16.gmra.mxu3 %v3041_v15  ;;  %v4409_v40 = vadd.f32 %v1683_v25, %v1354_v23  ;;  %v3052_v25 = vld [vmem:[%s4182_s6 + $0x310] sm:$0xf] }
 0x189   : > { %v1216_v43 = vpop.f32.mrf.mxu0 }
 0x18a   : > { %v1545_v44 = vpop.f32.mrf.mxu1 }
 0x18b   : > { %v1546_v45 = vadd.f32 %v1545_v44, %v1216_v43 }
 0x18d   : > { %v3444_v50 = vpack.c.bf16 %v1546_v45, %v1544_v29  ;;  %v2086_v51 = vadd.f32 %v2085_v36, %v1546_v45  ;;  %v2221_v53 = vmul.f32 %v1546_v45, %v1546_v45  ;;  %v2829_v36 = vor.u32 %v3284_v31, %v2828_v30  ;;  %v3044_v45 = vld [vmem:[%s4182_s6 + $0x300] sm:$0xf] }
 0x18f   : > { %3716 = vst [vmem:[%s4249_s26 + $0x58] sm:$0xff] %v3444_v50   ;;  %v2348_v61 = vadd.f32 %v2347_v42, %v2221_v53  ;;  %v1356_v42 = vpop.f32.mrf.mxu2  ;;  %v1685_v43 = vpop.f32.mrf.mxu3  ;;  %v3045_v53 = vor.u32 %v3338_v46, %v3044_v45 }
 0x190   : > { %v4411_v44 = vadd.f32 %v1685_v43, %v1356_v42 }
 0x191   : > { %v1219_v0 = vpop.f32.mrf.mxu0 }
 0x192   : > { %v1548_v1 = vpop.f32.mrf.mxu1  ;;  %v3584_v57 = vpack.c.bf16 %v4411_v44, %v4409_v40  ;;  %1398 = vmatmul.bf16.gmra.mxu2 %v3045_v53  ;;  %v2846_v53 = vld [vmem:[%s4182_s6 + $0x178] sm:$0xf0] }
 0x193   : > { %v1549_v3 = vadd.f32 %v1548_v1, %v1219_v0 }
 0x194   : > { %1258 = vmatmul.bf16.gmra.mxu0 %v2821_v62  ;;  %3744 = vst [vmem:[%s4249_s26 + $0x138] sm:$0xff] %v3584_v57  }
 0x195   : > { %v2087_v10 = vadd.f32 %v2086_v51, %v1549_v3  ;;  %v2222_v11 = vmul.f32 %v1549_v3, %v1549_v3  ;;  %1587 = vmatmul.bf16.gmra.mxu1 %v2825_v63 }
 0x197   : > { %v2349_v17 = vadd.f32 %v2348_v61, %v2222_v11  ;;  %v1359_v0 = vpop.f32.mrf.mxu2  ;;  %v1688_v1 = vpop.f32.mrf.mxu3 }
 0x198   : > { %1727 = vmatmul.bf16.gmra.mxu3 %v3049_v58 }
 0x199   : > { %v1221_v18 = vpop.f32.mrf.mxu0 }
 0x19a   : > { %v1550_v21 = vpop.f32.mrf.mxu1 }
 0x19b   : > { %v1551_v22 = vadd.f32 %v1550_v21, %v1221_v18 }
 0x19d   : > { %v3449_v26 = vpack.c.bf16 %v1551_v22, %v1549_v3  ;;  %v2088_v27 = vadd.f32 %v2087_v10, %v1551_v22  ;;  %v2223_v29 = vmul.f32 %v1551_v22, %v1551_v22  ;;  %v2838_v10 = vld [vmem:[%s4182_s6 + $0x168] sm:$0xf0] }
 0x19e   : > { %v2841_v13 = vor.u32 %v3285_v9, %v2838_v10 }
 0x19f   : > { %3717 = vst [vmem:[%s4249_s26 + $0x60] sm:$0xff] %v3449_v26   ;;  %v2350_v35 = vadd.f32 %v2349_v17, %v2223_v29  ;;  %v4425_v17 = vadd.f32 %v1688_v1, %v1359_v0  ;;  %v1361_v21 = vpop.f32.mrf.mxu2  ;;  %v1690_v22 = vpop.f32.mrf.mxu3  ;;  %v3340_v26 = vld [vmem:[%s4182_s6 + $0x314] sm:$0xf0] }
 0x1a0   : > { %v4427_v23 = vadd.f32 %v1690_v22, %v1361_v21  ;;  %v3053_v31 = vor.u32 %v3340_v26, %v3052_v25 }
 0x1a1   : > { %v1224_v38 = vpop.f32.mrf.mxu0 }
 0x1a2   : > { %v1553_v39 = vpop.f32.mrf.mxu1  ;;  %v3589_v34 = vpack.c.bf16 %v4427_v23, %v4425_v17  ;;  %1403 = vmatmul.bf16.gmra.mxu2 %v3053_v31  ;;  %v3290_v31 = vld [vmem:[%s4182_s6 + $0x184] sm:$0xf0] }
 0x1a3   : > { %v1554_v41 = vadd.f32 %v1553_v39, %v1224_v38 }
 0x1a4   : > { %1263 = vmatmul.bf16.gmra.mxu0 %v2829_v36  ;;  %3745 = vst [vmem:[%s4249_s26 + $0x140] sm:$0xff] %v3589_v34   ;;  %v2854_v34 = vld [vmem:[%s4182_s6 + $0x188] sm:$0xf0] }
 0x1a5   : > { %v2089_v50 = vadd.f32 %v2088_v27, %v1554_v41  ;;  %v2224_v51 = vmul.f32 %v1554_v41, %v1554_v41  ;;  %1592 = vmatmul.bf16.gmra.mxu1 %v2833_v37  ;;  %v3339_v27 = vld [vmem:[%s4182_s6 + $0x314] sm:$0xf] }
 0x1a7   : > { %v2351_v59 = vadd.f32 %v2350_v35, %v2224_v51  ;;  %v3057_v35 = vor.u32 %v3339_v27, %v3054_v33  ;;  %v1693_v42 = vpop.f32.mrf.mxu3  ;;  %v3287_v51 = vld [vmem:[%s4182_s6 + $0x174] sm:$0xf]  ;;  %v3289_v33 = vld [vmem:[%s4182_s6 + $0x184] sm:$0xf] }
 0x1a8   : > { %v2849_v58 = vor.u32 %v3287_v51, %v2846_v53  ;;  %v3343_v51 = vld [vmem:[%s4182_s6 + $0x334] sm:$0xf] }
 0x1a9   : > { %v1226_v61 = vpop.f32.mrf.mxu0  ;;  %1732 = vmatmul.bf16.gmra.mxu3 %v3057_v35 }
 0x1aa   : > { %v1555_v62 = vpop.f32.mrf.mxu1 }
 0x1ab   : > { %v1556_v63 = vadd.f32 %v1555_v62, %v1226_v61 }
 0x1ad   : > { %v3454_v3 = vpack.c.bf16 %v1556_v63, %v1554_v41  ;;  %v2090_v4 = vadd.f32 %v2089_v50, %v1556_v63  ;;  %v2225_v5 = vmul.f32 %v1556_v63, %v1556_v63  ;;  %v1364_v41 = vpop.f32.mrf.mxu2  ;;  %v3288_v50 = vld [vmem:[%s4182_s6 + $0x174] sm:$0xf0] }
 0x1ae   : > { %v2845_v57 = vor.u32 %v3288_v50, %v2844_v47  ;;  %v4441_v62 = vadd.f32 %v1693_v42, %v1364_v41  ;;  %v3068_v47 = vld [vmem:[%s4182_s6 + $0x330] sm:$0xf]  ;;  %v3344_v50 = vld [vmem:[%s4182_s6 + $0x334] sm:$0xf0] }
 0x1af   : > { %3718 = vst [vmem:[%s4249_s26 + $0x68] sm:$0xff] %v3454_v3   ;;  %v2352_v11 = vadd.f32 %v2351_v59, %v2225_v5  ;;  %v1695_v1 = vpop.f32.mrf.mxu3  ;;  %v3342_v5 = vld [vmem:[%s4182_s6 + $0x324] sm:$0xf0] }
 0x1b1   : > { %v1229_v14 = vpop.f32.mrf.mxu0 }
 0x1b2   : > { %v1558_v15 = vpop.f32.mrf.mxu1 }
 0x1b3   : > { %v1559_v18 = vadd.f32 %v1558_v15, %v1229_v14 }
 0x1b4   : > { %1268 = vmatmul.bf16.gmra.mxu0 %v2837_v12 }
 0x1b5   : > { %v2091_v29 = vadd.f32 %v2090_v4, %v1559_v18  ;;  %v2226_v30 = vmul.f32 %v1559_v18, %v1559_v18  ;;  %1597 = vmatmul.bf16.gmra.mxu1 %v2841_v13  ;;  %v1366_v0 = vpop.f32.mrf.mxu2  ;;  %v3060_v4 = vld [vmem:[%s4182_s6 + $0x320] sm:$0xf] }
 0x1b6   : > { %v4443_v3 = vadd.f32 %v1695_v1, %v1366_v0  ;;  %v3061_v10 = vor.u32 %v3342_v5, %v3060_v4 }
 0x1b7   : > { %v2353_v36 = vadd.f32 %v2352_v11, %v2226_v30  ;;  %v3062_v11 = vld [vmem:[%s4182_s6 + $0x328] sm:$0xf0]  ;;  %v1698_v25 = vpop.f32.mrf.mxu3  ;;  %v2852_v30 = vld [vmem:[%s4182_s6 + $0x180] sm:$0xf] }
 0x1b8   : > { %v3594_v12 = vpack.c.bf16 %v4443_v3, %v4441_v62  ;;  %v3065_v13 = vor.u32 %v3341_v7, %v3062_v11  ;;  %1408 = vmatmul.bf16.gmra.mxu2 %v3061_v10  ;;  %v2860_v11 = vld [vmem:[%s4182_s6 + $0x190] sm:$0xf] }
 0x1b9   : > { %v1231_v37 = vpop.f32.mrf.mxu0 }
 0x1ba   : > { %v1560_v38 = vpop.f32.mrf.mxu1  ;;  %3746 = vst [vmem:[%s4249_s26 + $0x148] sm:$0xff] %v3594_v12   ;;  %1737 = vmatmul.bf16.gmra.mxu3 %v3065_v13  ;;  %v3292_v12 = vld [vmem:[%s4182_s6 + $0x194] sm:$0xf0]  ;;  %v3291_v13 = vld [vmem:[%s4182_s6 + $0x194] sm:$0xf] }
 0x1bb   : > { %v1561_v39 = vadd.f32 %v1560_v38, %v1231_v37  ;;  %v2857_v37 = vor.u32 %v3289_v33, %v2854_v34  ;;  %v3076_v33 = vld [vmem:[%s4182_s6 + $0x340] sm:$0xf]  ;;  %v3346_v34 = vld [vmem:[%s4182_s6 + $0x344] sm:$0xf0] }
 0x1bd   : > { %v3459_v43 = vpack.c.bf16 %v1561_v39, %v1559_v18  ;;  %v2092_v45 = vadd.f32 %v2091_v29, %v1561_v39  ;;  %v2227_v46 = vmul.f32 %v1561_v39, %v1561_v39  ;;  %v1369_v22 = vpop.f32.mrf.mxu2 }
 0x1be   : > { %v4457_v41 = vadd.f32 %v1698_v25, %v1369_v22 }
 0x1bf   : > { %3719 = vst [vmem:[%s4249_s26 + $0x70] sm:$0xff] %v3459_v43   ;;  %v2354_v55 = vadd.f32 %v2353_v36, %v2227_v46  ;;  %v2853_v36 = vor.u32 %v3290_v31, %v2852_v30 }
 0x1c1   : > { %v1234_v59 = vpop.f32.mrf.mxu0 }
 0x1c2   : > { %v1563_v61 = vpop.f32.mrf.mxu1 }
 0x1c3   : > { %v1564_v63 = vadd.f32 %v1563_v61, %v1234_v59 }
 0x1c4   : > { %1273 = vmatmul.bf16.gmra.mxu0 %v2845_v57  ;;  %v3069_v57 = vor.u32 %v3344_v50, %v3068_v47 }
 0x1c5   : > { %v2093_v8 = vadd.f32 %v2092_v45, %v1564_v63  ;;  %v2228_v9 = vmul.f32 %v1564_v63, %v1564_v63  ;;  %1602 = vmatmul.bf16.gmra.mxu1 %v2849_v58  ;;  %v1371_v43 = vpop.f32.mrf.mxu2  ;;  %v1700_v45 = vpop.f32.mrf.mxu3  ;;  %v3070_v58 = vld [vmem:[%s4182_s6 + $0x338] sm:$0xf0] }
 0x1c6   : > { %v4459_v46 = vadd.f32 %v1700_v45, %v1371_v43  ;;  %v3073_v61 = vor.u32 %v3343_v51, %v3070_v58 }
 0x1c7   : > { %v2355_v14 = vadd.f32 %v2354_v55, %v2228_v9 }
 0x1c8   : > { %v3599_v59 = vpack.c.bf16 %v4459_v46, %v4457_v41  ;;  %1413 = vmatmul.bf16.gmra.mxu2 %v3069_v57 }
 0x1c9   : > { %v1236_v15 = vpop.f32.mrf.mxu0 }
 0x1ca   : > { %v1565_v18 = vpop.f32.mrf.mxu1  ;;  %3747 = vst [vmem:[%s4249_s26 + $0x150] sm:$0xff] %v3599_v59   ;;  %1742 = vmatmul.bf16.gmra.mxu3 %v3073_v61  ;;  %v2868_v61 = vld [vmem:[%s4182_s6 + $0x1a0] sm:$0xf] }
 0x1cb   : > { %v1566_v21 = vadd.f32 %v1565_v18, %v1236_v15  ;;  %v2861_v18 = vor.u32 %v3292_v12, %v2860_v11 }
 0x1cd   : > { %v3464_v26 = vpack.c.bf16 %v1566_v21, %v1564_v63  ;;  %v2094_v27 = vadd.f32 %v2093_v8, %v1566_v21  ;;  %v2229_v29 = vmul.f32 %v1566_v21, %v1566_v21  ;;  %v1374_v5 = vpop.f32.mrf.mxu2  ;;  %v1703_v7 = vpop.f32.mrf.mxu3 }
 0x1cf   : > { %3720 = vst [vmem:[%s4249_s26 + $0x78] sm:$0xff] %v3464_v26   ;;  %v2356_v35 = vadd.f32 %v2355_v14, %v2229_v29  ;;  %v2862_v14 = vld [vmem:[%s4182_s6 + $0x198] sm:$0xf0]  ;;  %v4473_v26 = vadd.f32 %v1703_v7, %v1374_v5 }
 0x1d0   : > { %v2865_v21 = vor.u32 %v3291_v13, %v2862_v14 }
 0x1d1   : > { %v1239_v38 = vpop.f32.mrf.mxu0 }
 0x1d2   : > { %v1568_v39 = vpop.f32.mrf.mxu1 }
 0x1d3   : > { %v1569_v42 = vadd.f32 %v1568_v39, %v1239_v38  ;;  %v3077_v38 = vor.u32 %v3346_v34, %v3076_v33  ;;  %v3078_v39 = vld [vmem:[%s4182_s6 + $0x348] sm:$0xf0] }
 0x1d4   : > { %1278 = vmatmul.bf16.gmra.mxu0 %v2853_v36 }
 0x1d5   : > { %v2095_v53 = vadd.f32 %v2094_v27, %v1569_v42  ;;  %v2230_v55 = vmul.f32 %v1569_v42, %v1569_v42  ;;  %1607 = vmatmul.bf16.gmra.mxu1 %v2857_v37  ;;  %v1376_v29 = vpop.f32.mrf.mxu2  ;;  %v1705_v30 = vpop.f32.mrf.mxu3 }
 0x1d6   : > { %v4475_v31 = vadd.f32 %v1705_v30, %v1376_v29  ;;  %v3086_v29 = vld [vmem:[%s4182_s6 + $0x358] sm:$0xf0] }
 0x1d7   : > { %v2357_v63 = vadd.f32 %v2356_v35, %v2230_v55  ;;  %v3345_v35 = vld [vmem:[%s4182_s6 + $0x344] sm:$0xf] }
 0x1d8   : > { %v3081_v43 = vor.u32 %v3345_v35, %v3078_v39  ;;  %1418 = vmatmul.bf16.gmra.mxu2 %v3077_v38 }
 0x1d9   : > { %v1241_v0 = vpop.f32.mrf.mxu0 }
 0x1da   : > { %v1570_v1 = vpop.f32.mrf.mxu1  ;;  %1747 = vmatmul.bf16.gmra.mxu3 %v3081_v43 }
 0x1db   : > { %v1571_v4 = vadd.f32 %v1570_v1, %v1241_v0  ;;  %v3293_v0 = vld [vmem:[%s4182_s6 + $0x1a4] sm:$0xf]  ;;  %v2870_v1 = vld [vmem:[%s4182_s6 + $0x1a8] sm:$0xf0] }
 0x1dc   : > { %v2873_v7 = vor.u32 %v3293_v0, %v2870_v1 }
 0x1dd   : > { %v3469_v8 = vpack.c.bf16 %v1571_v4, %v1569_v42  ;;  %v2096_v9 = vadd.f32 %v2095_v53, %v1571_v4  ;;  %v2231_v10 = vmul.f32 %v1571_v4, %v1571_v4  ;;  %v3604_v42 = vpack.c.bf16 %v4475_v31, %v4473_v26  ;;  %v1379_v53 = vpop.f32.mrf.mxu2  ;;  %v1708_v55 = vpop.f32.mrf.mxu3 }
 0x1df   : > { %3721 = vst [vmem:[%s4249_s26 + $0x80] sm:$0xff] %v3469_v8   ;;  %v2358_v15 = vadd.f32 %v2357_v63, %v2231_v10  ;;  %v3294_v63 = vld [vmem:[%s4182_s6 + $0x1a4] sm:$0xf0]  ;;  %v4489_v10 = vadd.f32 %v1708_v55, %v1379_v53  ;;  %v2878_v53 = vld [vmem:[%s4182_s6 + $0x1b8] sm:$0xf0] }
 0x1e0   : > { %3748 = vst [vmem:[%s4249_s26 + $0x158] sm:$0xff] %v3604_v42   ;;  %v2869_v5 = vor.u32 %v3294_v63, %v2868_v61 }
 0x1e1   : > { %v1244_v22 = vpop.f32.mrf.mxu0 }
 0x1e2   : > { %v1573_v25 = vpop.f32.mrf.mxu1 }
 0x1e3   : > { %v1574_v27 = vadd.f32 %v1573_v25, %v1244_v22 }
 0x1e4   : > { %1283 = vmatmul.bf16.gmra.mxu0 %v2861_v18  ;;  %v3348_v18 = vld [vmem:[%s4182_s6 + $0x354] sm:$0xf0] }
 0x1e5   : > { %v2097_v36 = vadd.f32 %v2096_v9, %v1574_v27  ;;  %v2232_v37 = vmul.f32 %v1574_v27, %v1574_v27  ;;  %1612 = vmatmul.bf16.gmra.mxu1 %v2865_v21  ;;  %v1381_v12 = vpop.f32.mrf.mxu2  ;;  %v1710_v13 = vpop.f32.mrf.mxu3  ;;  %v3347_v21 = vld [vmem:[%s4182_s6 + $0x354] sm:$0xf] }
 0x1e6   : > { %v4491_v14 = vadd.f32 %v1710_v13, %v1381_v12  ;;  %v3089_v33 = vor.u32 %v3347_v21, %v3086_v29 }
 0x1e7   : > { %v2359_v45 = vadd.f32 %v2358_v15, %v2232_v37  ;;  %v3084_v15 = vld [vmem:[%s4182_s6 + $0x350] sm:$0xf] }
 0x1e8   : > { %v3609_v30 = vpack.c.bf16 %v4491_v14, %v4489_v10 }
 0x1e9   : > { %v1246_v47 = vpop.f32.mrf.mxu0 }
 0x1ea   : > { %v1575_v50 = vpop.f32.mrf.mxu1  ;;  %3749 = vst [vmem:[%s4249_s26 + $0x160] sm:$0xff] %v3609_v30   ;;  %1752 = vmatmul.bf16.gmra.mxu3 %v3089_v33 }
 0x1eb   : > { %v1576_v51 = vadd.f32 %v1575_v50, %v1246_v47  ;;  %v2876_v47 = vld [vmem:[%s4182_s6 + $0x1b0] sm:$0xf]  ;;  %v3296_v50 = vld [vmem:[%s4182_s6 + $0x1b4] sm:$0xf0] }
 0x1ed   : > { %v3474_v57 = vpack.c.bf16 %v1576_v51, %v1574_v27  ;;  %v2098_v58 = vadd.f32 %v2097_v36, %v1576_v51  ;;  %v2233_v59 = vmul.f32 %v1576_v51, %v1576_v51  ;;  %v3085_v27 = vor.u32 %v3348_v18, %v3084_v15  ;;  %v1384_v38 = vpop.f32.mrf.mxu2  ;;  %v1713_v39 = vpop.f32.mrf.mxu3  ;;  %v3295_v51 = vld [vmem:[%s4182_s6 + $0x1b4] sm:$0xf]  ;;  %v3094_v15 = vld [vmem:[%s4182_s6 + $0x368] sm:$0xf0] }
 0x1ee   : > { %v4505_v63 = vadd.f32 %v1713_v39, %v1384_v38  ;;  %v3298_v38 = vld [vmem:[%s4182_s6 + $0x1c4] sm:$0xf0]  ;;  %v3297_v39 = vld [vmem:[%s4182_s6 + $0x1c4] sm:$0xf] }
 0x1ef   : > { %3722 = vst [vmem:[%s4249_s26 + $0x88] sm:$0xff] %v3474_v57   ;;  %v2360_v4 = vadd.f32 %v2359_v45, %v2233_v59  ;;  %1423 = vmatmul.bf16.gmra.mxu2 %v3085_v27  ;;  %v2877_v57 = vor.u32 %v3296_v50, %v2876_v47 }
 0x1f1   : > { %v1249_v8 = vpop.f32.mrf.mxu0 }
 0x1f2   : > { %v1578_v9 = vpop.f32.mrf.mxu1 }
 0x1f3   : > { %v1579_v11 = vadd.f32 %v1578_v9, %v1249_v8  ;;  %v3350_v8 = vld [vmem:[%s4182_s6 + $0x364] sm:$0xf0]  ;;  %v3349_v9 = vld [vmem:[%s4182_s6 + $0x364] sm:$0xf] }
 0x1f4   : > { %1288 = vmatmul.bf16.gmra.mxu0 %v2869_v5  ;;  %v3097_v21 = vor.u32 %v3349_v9, %v3094_v15  ;;  %v3102_v9 = vld [vmem:[%s4182_s6 + $0x378] sm:$0xf0] }
 0x1f5   : > { %v2099_v22 = vadd.f32 %v2098_v58, %v1579_v11  ;;  %v2234_v25 = vmul.f32 %v1579_v11, %v1579_v11  ;;  %1617 = vmatmul.bf16.gmra.mxu1 %v2873_v7  ;;  %v2881_v58 = vor.u32 %v3295_v51, %v2878_v53  ;;  %v1386_v1 = vpop.f32.mrf.mxu2  ;;  %v3092_v7 = vld [vmem:[%s4182_s6 + $0x360] sm:$0xf] }
 0x1f6   : > { %v3093_v13 = vor.u32 %v3350_v8, %v3092_v7 }
 0x1f7   : > { %v2361_v34 = vadd.f32 %v2360_v4, %v2234_v25  ;;  %v1715_v4 = vpop.f32.mrf.mxu3 }
 0x1f8   : > { %v4507_v5 = vadd.f32 %v1715_v4, %v1386_v1  ;;  %v3351_v1 = vld [vmem:[%s4182_s6 + $0x374] sm:$0xf] }
 0x1f9   : > { %v1251_v35 = vpop.f32.mrf.mxu0 }
 0x1fa   : > { %v1580_v36 = vpop.f32.mrf.mxu1  ;;  %v3614_v18 = vpack.c.bf16 %v4507_v5, %v4505_v63  ;;  %1757 = vmatmul.bf16.gmra.mxu3 %v3097_v21 }
 0x1fb   : > { %v1581_v37 = vadd.f32 %v1580_v36, %v1251_v35 }
 0x1fc   : > { %3750 = vst [vmem:[%s4249_s26 + $0x168] sm:$0xff] %v3614_v18  }
 0x1fd   : > { %v3479_v42 = vpack.c.bf16 %v1581_v37, %v1579_v11  ;;  %v2100_v43 = vadd.f32 %v2099_v22, %v1581_v37  ;;  %v2235_v45 = vmul.f32 %v1581_v37, %v1581_v37  ;;  %v1389_v30 = vpop.f32.mrf.mxu2  ;;  %v2884_v37 = vld [vmem:[%s4182_s6 + $0x1c0] sm:$0xf] }
 0x1ff   : > { %3723 = vst [vmem:[%s4249_s26 + $0x90] sm:$0xff] %v3479_v42   ;;  %v2362_v55 = vadd.f32 %v2361_v34, %v2235_v45  ;;  %1428 = vmatmul.bf16.gmra.mxu2 %v3093_v13  ;;  %v1718_v33 = vpop.f32.mrf.mxu3  ;;  %v2886_v42 = vld [vmem:[%s4182_s6 + $0x1c8] sm:$0xf0]  ;;  %v2885_v45 = vor.u32 %v3298_v38, %v2884_v37 }
 0x200   : > { %v2889_v47 = vor.u32 %v3297_v39, %v2886_v42  ;;  %v4521_v53 = vadd.f32 %v1718_v33, %v1389_v30  ;;  %v2892_v33 = vld [vmem:[%s4182_s6 + $0x1d0] sm:$0xf] }
 0x201   : > { %v1254_v59 = vpop.f32.mrf.mxu0 }
 0x202   : > { %v1583_v61 = vpop.f32.mrf.mxu1 }
 0x203   : > { %v1584_v0 = vadd.f32 %v1583_v61, %v1254_v59  ;;  %v3100_v61 = vld [vmem:[%s4182_s6 + $0x370] sm:$0xf] }
 0x204   : > { %1293 = vmatmul.bf16.gmra.mxu0 %v2877_v57 }
 0x205   : > { %v2101_v11 = vadd.f32 %v2100_v43, %v1584_v0  ;;  %v2236_v12 = vmul.f32 %v1584_v0, %v1584_v0  ;;  %1622 = vmatmul.bf16.gmra.mxu1 %v2881_v58  ;;  %v1391_v57 = vpop.f32.mrf.mxu2 }
 0x207   : > { %v2363_v22 = vadd.f32 %v2362_v55, %v2236_v12  ;;  %v1720_v58 = vpop.f32.mrf.mxu3  ;;  %v3105_v12 = vor.u32 %v3351_v1, %v3102_v9 }
 0x208   : > { %v4523_v59 = vadd.f32 %v1720_v58, %v1391_v57  ;;  %v3108_v57 = vld [vmem:[%s4182_s6 + $0x380] sm:$0xf]  ;;  %v3354_v58 = vld [vmem:[%s4182_s6 + $0x384] sm:$0xf0] }
 0x209   : > { %v1256_v25 = vpop.f32.mrf.mxu0 }
 0x20a   : > { %v1585_v27 = vpop.f32.mrf.mxu1  ;;  %1762 = vmatmul.bf16.gmra.mxu3 %v3105_v12 }
 0x20b   : > { %v1586_v29 = vadd.f32 %v1585_v27, %v1256_v25 }
 0x20d   : > { %v3484_v34 = vpack.c.bf16 %v1586_v29, %v1584_v0  ;;  %v2102_v35 = vadd.f32 %v2101_v11, %v1586_v29  ;;  %v2237_v36 = vmul.f32 %v1586_v29, %v1586_v29  ;;  %v3352_v0 = vld [vmem:[%s4182_s6 + $0x374] sm:$0xf0]  ;;  %v3619_v11 = vpack.c.bf16 %v4523_v59, %v4521_v53 }
 0x20e   : > { %v3101_v8 = vor.u32 %v3352_v0, %v3100_v61  ;;  %v3353_v61 = vld [vmem:[%s4182_s6 + $0x384] sm:$0xf] }
 0x20f   : > { %3724 = vst [vmem:[%s4249_s26 + $0x98] sm:$0xff] %v3484_v34   ;;  %v2364_v43 = vadd.f32 %v2363_v22, %v2237_v36  ;;  %v1394_v22 = vpop.f32.mrf.mxu2  ;;  %v1723_v25 = vpop.f32.mrf.mxu3  ;;  %v3300_v34 = vld [vmem:[%s4182_s6 + $0x1d4] sm:$0xf0]  ;;  %v2894_v36 = vld [vmem:[%s4182_s6 + $0x1d8] sm:$0xf0] }
 0x210   : > { %1433 = vmatmul.bf16.gmra.mxu2 %v3101_v8  ;;  %3751 = vst [vmem:[%s4249_s26 + $0x170] sm:$0xff] %v3619_v11   ;;  %v2893_v38 = vor.u32 %v3300_v34, %v2892_v33  ;;  %v3301_v33 = vld [vmem:[%s4182_s6 + $0x1e4] sm:$0xf]  ;;  %v2902_v34 = vld [vmem:[%s4182_s6 + $0x1e8] sm:$0xf0] }
 0x211   : > { %v1259_v50 = vpop.f32.mrf.mxu0 }
 0x212   : > { %v1588_v51 = vpop.f32.mrf.mxu1 }
 0x213   : > { %v1589_v55 = vadd.f32 %v1588_v51, %v1259_v50 }
 0x214   : > { %1298 = vmatmul.bf16.gmra.mxu0 %v2885_v45  ;;  %v4537_v45 = vadd.f32 %v1723_v25, %v1394_v22 }
 0x215   : > { %v2103_v4 = vadd.f32 %v2102_v35, %v1589_v55  ;;  %v2238_v7 = vmul.f32 %v1589_v55, %v1589_v55  ;;  %1627 = vmatmul.bf16.gmra.mxu1 %v2889_v47  ;;  %v3299_v35 = vld [vmem:[%s4182_s6 + $0x1d4] sm:$0xf] }
 0x216   : > { %v2897_v39 = vor.u32 %v3299_v35, %v2894_v36 }
 0x217   : > { %v2365_v13 = vadd.f32 %v2364_v43, %v2238_v7  ;;  %v1396_v50 = vpop.f32.mrf.mxu2  ;;  %v1725_v51 = vpop.f32.mrf.mxu3  ;;  %v3110_v7 = vld [vmem:[%s4182_s6 + $0x388] sm:$0xf0] }
 0x218   : > { %v3113_v9 = vor.u32 %v3353_v61, %v3110_v7  ;;  %v3355_v61 = vld [vmem:[%s4182_s6 + $0x394] sm:$0xf]  ;;  %v3118_v7 = vld [vmem:[%s4182_s6 + $0x398] sm:$0xf0] }
 0x219   : > { %v1261_v15 = vpop.f32.mrf.mxu0 }
 0x21a   : > { %v1590_v18 = vpop.f32.mrf.mxu1  ;;  %1767 = vmatmul.bf16.gmra.mxu3 %v3113_v9  ;;  %v3121_v9 = vor.u32 %v3355_v61, %v3118_v7  ;;  %v3124_v61 = vld [vmem:[%s4182_s6 + $0x3a0] sm:$0xf] }
 0x21b   : > { %v1591_v21 = vadd.f32 %v1590_v18, %v1261_v15 }
 0x21d   : > { %v3489_v27 = vpack.c.bf16 %v1591_v21, %v1589_v55  ;;  %v2104_v29 = vadd.f32 %v2103_v4, %v1591_v21  ;;  %v2239_v30 = vmul.f32 %v1591_v21, %v1591_v21  ;;  %v4539_v55 = vadd.f32 %v1725_v51, %v1396_v50 }
 0x21e   : > { %v3109_v4 = vor.u32 %v3354_v58, %v3108_v57  ;;  %v3116_v57 = vld [vmem:[%s4182_s6 + $0x390] sm:$0xf]  ;;  %v3356_v58 = vld [vmem:[%s4182_s6 + $0x394] sm:$0xf0] }
 0x21f   : > { %3725 = vst [vmem:[%s4249_s26 + $0xa0] sm:$0xff] %v3489_v27   ;;  %v2366_v37 = vadd.f32 %v2365_v13, %v2239_v30  ;;  %v3624_v8 = vpack.c.bf16 %v4539_v55, %v4537_v45  ;;  %v1399_v18 = vpop.f32.mrf.mxu2  ;;  %v1728_v21 = vpop.f32.mrf.mxu3  ;;  %v3302_v30 = vld [vmem:[%s4182_s6 + $0x1e4] sm:$0xf0] }
 0x220   : > { %1438 = vmatmul.bf16.gmra.mxu2 %v3109_v4  ;;  %v3117_v4 = vor.u32 %v3356_v58, %v3116_v57 }
 0x221   : > { %v1264_v42 = vpop.f32.mrf.mxu0  ;;  %3752 = vst [vmem:[%s4249_s26 + $0x178] sm:$0xff] %v3624_v8  }
 0x222   : > { %v1593_v43 = vpop.f32.mrf.mxu1 }
 0x223   : > { %v1594_v47 = vadd.f32 %v1593_v43, %v1264_v42  ;;  %v4553_v42 = vadd.f32 %v1728_v21, %v1399_v18 }
 0x224   : > { %1303 = vmatmul.bf16.gmra.mxu0 %v2893_v38 }
 0x225   : > { %v2105_v0 = vadd.f32 %v2104_v29, %v1594_v47  ;;  %v2240_v1 = vmul.f32 %v1594_v47, %v1594_v47  ;;  %1632 = vmatmul.bf16.gmra.mxu1 %v2897_v39  ;;  %v2900_v29 = vld [vmem:[%s4182_s6 + $0x1e0] sm:$0xf] }
 0x226   : > { %v2901_v36 = vor.u32 %v3302_v30, %v2900_v29  ;;  %v2908_v29 = vld [vmem:[%s4182_s6 + $0x1f0] sm:$0xf]  ;;  %v3304_v30 = vld [vmem:[%s4182_s6 + $0x1f4] sm:$0xf0] }
 0x227   : > { %v2367_v11 = vadd.f32 %v2366_v37, %v2240_v1  ;;  %v2905_v37 = vor.u32 %v3301_v33, %v2902_v34  ;;  %v1730_v50 = vpop.f32.mrf.mxu3  ;;  %v3303_v33 = vld [vmem:[%s4182_s6 + $0x1f4] sm:$0xf]  ;;  %v2910_v34 = vld [vmem:[%s4182_s6 + $0x1f8] sm:$0xf0] }
 0x229   : > { %v1266_v12 = vpop.f32.mrf.mxu0 }
 0x22a   : > { %v1595_v13 = vpop.f32.mrf.mxu1  ;;  %1772 = vmatmul.bf16.gmra.mxu3 %v3121_v9  ;;  %v3126_v9 = vld [vmem:[%s4182_s6 + $0x3a8] sm:$0xf0] }
 0x22b   : > { %v1596_v15 = vadd.f32 %v1595_v13, %v1266_v12 }
 0x22d   : > { %v3494_v22 = vpack.c.bf16 %v1596_v15, %v1594_v47  ;;  %v2106_v25 = vadd.f32 %v2105_v0, %v1596_v15  ;;  %v2241_v27 = vmul.f32 %v1596_v15, %v1596_v15  ;;  %v1401_v47 = vpop.f32.mrf.mxu2 }
 0x22e   : > { %v4555_v51 = vadd.f32 %v1730_v50, %v1401_v47 }
 0x22f   : > { %3726 = vst [vmem:[%s4249_s26 + $0xa8] sm:$0xff] %v3494_v22   ;;  %v2368_v35 = vadd.f32 %v2367_v11, %v2241_v27  ;;  %v1733_v21 = vpop.f32.mrf.mxu3 }
 0x230   : > { %v3629_v8 = vpack.c.bf16 %v4555_v51, %v4553_v42  ;;  %1443 = vmatmul.bf16.gmra.mxu2 %v3117_v4 }
 0x231   : > { %v1269_v38 = vpop.f32.mrf.mxu0 }
 0x232   : > { %v1598_v39 = vpop.f32.mrf.mxu1  ;;  %3753 = vst [vmem:[%s4249_s26 + $0x180] sm:$0xff] %v3629_v8  }
 0x233   : > { %v1599_v43 = vadd.f32 %v1598_v39, %v1269_v38 }
 0x234   : > { %1308 = vmatmul.bf16.gmra.mxu0 %v2901_v36  ;;  %v2909_v36 = vor.u32 %v3304_v30, %v2908_v29 }
 0x235   : > { %v2107_v0 = vadd.f32 %v2106_v25, %v1599_v43  ;;  %v2242_v1 = vmul.f32 %v1599_v43, %v1599_v43  ;;  %1637 = vmatmul.bf16.gmra.mxu1 %v2905_v37  ;;  %v1404_v18 = vpop.f32.mrf.mxu2  ;;  %v2913_v37 = vor.u32 %v3303_v33, %v2910_v34 }
 0x236   : > { %v4569_v47 = vadd.f32 %v1733_v21, %v1404_v18 }
 0x237   : > { %v2369_v11 = vadd.f32 %v2368_v35, %v2242_v1  ;;  %v1735_v57 = vpop.f32.mrf.mxu3  ;;  %v3357_v1 = vld [vmem:[%s4182_s6 + $0x3a4] sm:$0xf] }
 0x238   : > { %5058 = vst [vmem:[#allocation15_spill] sm:$0xff] %v4569_v47 }
 0x239   : > { %v1271_v12 = vpop.f32.mrf.mxu0 }
 0x23a   : > { %v1600_v13 = vpop.f32.mrf.mxu1 }
 0x23b   : > { %v1601_v15 = vadd.f32 %v1600_v13, %v1271_v12  ;;  %v3129_v12 = vor.u32 %v3357_v1, %v3126_v9 }
 0x23d   : > { %v3499_v22 = vpack.c.bf16 %v1601_v15, %v1599_v43  ;;  %v2108_v25 = vadd.f32 %v2107_v0, %v1601_v15  ;;  %v2243_v27 = vmul.f32 %v1601_v15, %v1601_v15  ;;  %v1406_v43 = vpop.f32.mrf.mxu2  ;;  %v3358_v0 = vld [vmem:[%s4182_s6 + $0x3a4] sm:$0xf0]  ;;  %1777 = vmatmul.bf16.gmra.mxu3 %v3129_v12 }
 0x23e   : > { %v4571_v58 = vadd.f32 %v1735_v57, %v1406_v43  ;;  %v3125_v8 = vor.u32 %v3358_v0, %v3124_v61  ;;  %v3132_v57 = vld [vmem:[%s4182_s6 + $0x3b0] sm:$0xf]  ;;  %v3360_v61 = vld [vmem:[%s4182_s6 + $0x3b4] sm:$0xf0]  ;;  %v3359_v0 = vld [vmem:[%s4182_s6 + $0x3b4] sm:$0xf] }
 0x23f   : > { %3727 = vst [vmem:[%s4249_s26 + $0xb0] sm:$0xff] %v3499_v22   ;;  %v2370_v35 = vadd.f32 %v2369_v11, %v2243_v27 }
 0x240   : > { %5059 = vst [vmem:[#allocation16_spill] sm:$0xff] %v4571_v58  ;;  %v3634_v11 = vpack.c.bf16 %v4571_v58, %v4569_v47  ;;  %1448 = vmatmul.bf16.gmra.mxu2 %v3125_v8 }
 0x241   : > { %v1274_v38 = vpop.f32.mrf.mxu0 }
 0x242   : > { %v1603_v39 = vpop.f32.mrf.mxu1  ;;  %3754 = vst [vmem:[%s4249_s26 + $0x188] sm:$0xff] %v3634_v11  }
 0x243   : > { %v1604_v50 = vadd.f32 %v1603_v39, %v1274_v38 }
 0x244   : > { %1313 = vmatmul.bf16.gmra.mxu0 %v2909_v36 }
 0x245   : > { %v2109_v4 = vadd.f32 %v2108_v25, %v1604_v50  ;;  %v2244_v7 = vmul.f32 %v1604_v50, %v1604_v50  ;;  %1642 = vmatmul.bf16.gmra.mxu1 %v2913_v37  ;;  %v1409_v22 = vpop.f32.mrf.mxu2  ;;  %v1738_v25 = vpop.f32.mrf.mxu3 }
 0x247   : > { %v2371_v13 = vadd.f32 %v2370_v35, %v2244_v7  ;;  %v4581_v35 = vadd.f32 %v1738_v25, %v1409_v22  ;;  %v3134_v7 = vld [vmem:[%s4182_s6 + $0x3b8] sm:$0xf0] }
 0x248   : > { %v3137_v9 = vor.u32 %v3359_v0, %v3134_v7  ;;  %v3362_v0 = vld [vmem:[%s4182_s6 + $0x3c4] sm:$0xf0]  ;;  %v3142_v7 = vld [vmem:[%s4182_s6 + $0x3c8] sm:$0xf0] }
 0x249   : > { %v1276_v15 = vpop.f32.mrf.mxu0  ;;  %5060 = vst [vmem:[#allocation17_spill] sm:$0xff] %v4581_v35 }
 0x24a   : > { %v1605_v18 = vpop.f32.mrf.mxu1 }
 0x24b   : > { %v1606_v21 = vadd.f32 %v1605_v18, %v1276_v15 }
 0x24d   : > { %v3504_v27 = vpack.c.bf16 %v1606_v21, %v1604_v50  ;;  %v2110_v29 = vadd.f32 %v2109_v4, %v1606_v21  ;;  %v2245_v30 = vmul.f32 %v1606_v21, %v1606_v21  ;;  %v1411_v38 = vpop.f32.mrf.mxu2  ;;  %v1740_v39 = vpop.f32.mrf.mxu3  ;;  %v3133_v4 = vor.u32 %v3360_v61, %v3132_v57  ;;  %1782 = vmatmul.bf16.gmra.mxu3 %v3137_v9  ;;  %v3140_v61 = vld [vmem:[%s4182_s6 + $0x3c0] sm:$0xf] }
 0x24e   : > { %v4583_v43 = vadd.f32 %v1740_v39, %v1411_v38 }
 0x24f   : > { %3728 = vst [vmem:[%s4249_s26 + $0xb8] sm:$0xff] %v3504_v27   ;;  %v2372_v33 = vadd.f32 %v2371_v13, %v2245_v30 }
 0x250   : > { %5061 = vst [vmem:[#allocation18_spill] sm:$0xff] %v4583_v43  ;;  %v3639_v8 = vpack.c.bf16 %v4583_v43, %v4581_v35  ;;  %1453 = vmatmul.bf16.gmra.mxu2 %v3133_v4 }
 0x251   : > { %v1279_v34 = vpop.f32.mrf.mxu0 }
 0x252   : > { %v1608_v36 = vpop.f32.mrf.mxu1  ;;  %3755 = vst [vmem:[%s4249_s26 + $0x190] sm:$0xff] %v3639_v8  }
 0x253   : > { %v1609_v37 = vadd.f32 %v1608_v36, %v1279_v34 }
 0x255   : > { %v2111_v1 = vadd.f32 %v2110_v29, %v1609_v37  ;;  %v2246_v50 = vmul.f32 %v1609_v37, %v1609_v37  ;;  %v1414_v18 = vpop.f32.mrf.mxu2  ;;  %v1743_v21 = vpop.f32.mrf.mxu3 }
 0x257   : > { %v2373_v11 = vadd.f32 %v2372_v33, %v2246_v50  ;;  %v4593_v33 = vadd.f32 %v1743_v21, %v1414_v18  ;;  %v3361_v50 = vld [vmem:[%s4182_s6 + $0x3c4] sm:$0xf] }
 0x258   : > { %v3145_v9 = vor.u32 %v3361_v50, %v3142_v7  ;;  %v3148_v50 = vld [vmem:[%s4182_s6 + $0x3d0] sm:$0xf] }
 0x259   : > { %v1281_v12 = vpop.f32.mrf.mxu0  ;;  %5062 = vst [vmem:[#allocation19_spill] sm:$0xff] %v4593_v33 }
 0x25a   : > { %v1610_v13 = vpop.f32.mrf.mxu1 }
 0x25b   : > { %v1611_v15 = vadd.f32 %v1610_v13, %v1281_v12 }
 0x25d   : > { %v3509_v22 = vpack.c.bf16 %v1611_v15, %v1609_v37  ;;  %v2112_v25 = vadd.f32 %v2111_v1, %v1611_v15  ;;  %v2247_v27 = vmul.f32 %v1611_v15, %v1611_v15  ;;  %v1416_v38 = vpop.f32.mrf.mxu2  ;;  %v1745_v39 = vpop.f32.mrf.mxu3  ;;  %v3141_v1 = vor.u32 %v3362_v0, %v3140_v61  ;;  %1787 = vmatmul.bf16.gmra.mxu3 %v3145_v9 }
 0x25e   : > { %v4595_v57 = vadd.f32 %v1745_v39, %v1416_v38 }
 0x25f   : > { %3729 = vst [vmem:[%s4249_s26 + $0xc0] sm:$0xff] %v3509_v22   ;;  %v2374_v29 = vadd.f32 %v2373_v11, %v2247_v27 }
 0x260   : > { %5063 = vst [vmem:[#allocation20_spill] sm:$0xff] %v4595_v57  ;;  %v3644_v8 = vpack.c.bf16 %v4595_v57, %v4593_v33  ;;  %1458 = vmatmul.bf16.gmra.mxu2 %v3141_v1  ;;  %v3363_v1 = vld [vmem:[%s4182_s6 + $0x3d4] sm:$0xf] }
 0x261   : > { %v1284_v30 = vpop.f32.mrf.mxu0 }
 0x262   : > { %v1613_v34 = vpop.f32.mrf.mxu1  ;;  %3756 = vst [vmem:[%s4249_s26 + $0x198] sm:$0xff] %v3644_v8  }
 0x263   : > { %v1614_v36 = vadd.f32 %v1613_v34, %v1284_v30 }
 0x265   : > { %v2113_v4 = vadd.f32 %v2112_v25, %v1614_v36  ;;  %v2248_v37 = vmul.f32 %v1614_v36, %v1614_v36  ;;  %v1419_v18 = vpop.f32.mrf.mxu2  ;;  %v1748_v21 = vpop.f32.mrf.mxu3 }
 0x266   : > { %v4609_v38 = vadd.f32 %v1748_v21, %v1419_v18 }
 0x267   : > { %v2375_v11 = vadd.f32 %v2374_v29, %v2248_v37  ;;  %v3364_v37 = vld [vmem:[%s4182_s6 + $0x3d4] sm:$0xf0] }
 0x268   : > { %5064 = vst [vmem:[#allocation21_spill] sm:$0xff] %v4609_v38 }
 0x269   : > { %v1286_v12 = vpop.f32.mrf.mxu0 }
 0x26a   : > { %v1615_v13 = vpop.f32.mrf.mxu1 }
 0x26b   : > { %v1616_v15 = vadd.f32 %v1615_v13, %v1286_v12 }
 0x26d   : > { %v3514_v22 = vpack.c.bf16 %v1616_v15, %v1614_v36  ;;  %v4604_v25 = vadd.f32 %v2113_v4, %v1616_v15  ;;  %v2249_v27 = vmul.f32 %v1616_v15, %v1616_v15  ;;  %v1421_v39 = vpop.f32.mrf.mxu2  ;;  %v1750_v61 = vpop.f32.mrf.mxu3  ;;  %v3149_v36 = vor.u32 %v3364_v37, %v3148_v50  ;;  %v3150_v4 = vld [vmem:[%s4182_s6 + $0x3d8] sm:$0xf0] }
 0x26e   : > { %v4611_v0 = vadd.f32 %v1750_v61, %v1421_v39  ;;  %v3153_v8 = vor.u32 %v3363_v1, %v3150_v4  ;;  %v3365_v1 = vld [vmem:[%s4182_s6 + $0x3e4] sm:$0xf]  ;;  %v3158_v4 = vld [vmem:[%s4182_s6 + $0x3e8] sm:$0xf0] }
 0x26f   : > { %3730 = vst [vmem:[%s4249_s26 + $0xc8] sm:$0xff] %v3514_v22   ;;  %v4607_v30 = vadd.f32 %v2375_v11, %v2249_v27 }
 0x270   : > { %5065 = vst [vmem:[#allocation22_spill] sm:$0xff] %v4611_v0  ;;  %v3649_v7 = vpack.c.bf16 %v4611_v0, %v4609_v38  ;;  %1463 = vmatmul.bf16.gmra.mxu2 %v3149_v36  ;;  %1792 = vmatmul.bf16.gmra.mxu3 %v3153_v8  ;;  %v3161_v8 = vor.u32 %v3365_v1, %v3158_v4 }
 0x271   : > { %v1289_v29 = vpop.f32.mrf.mxu0 }
 0x272   : > { %v1618_v34 = vpop.f32.mrf.mxu1  ;;  %3757 = vst [vmem:[%s4249_s26 + $0x1a0] sm:$0xff] %v3649_v7  }
 0x273   : > { %v4620_v12 = vadd.f32 %v1618_v34, %v1289_v29  ;;  %v3156_v29 = vld [vmem:[%s4182_s6 + $0x3e0] sm:$0xf]  ;;  %v3366_v34 = vld [vmem:[%s4182_s6 + $0x3e4] sm:$0xf0] }
 0x274   : > { %v3157_v36 = vor.u32 %v3366_v34, %v3156_v29 }
 0x275   : > { %v1424_v15 = vpop.f32.mrf.mxu2  ;;  %v1753_v18 = vpop.f32.mrf.mxu3 }
 0x276   : > { %v4627_v39 = vadd.f32 %v1753_v18, %v1424_v15 }
 0x278   : > { %5066 = vst [vmem:[#allocation23_spill] sm:$0xff] %v4627_v39 }
 0x279   : > { %v1291_v9 = vpop.f32.mrf.mxu0 }
 0x27a   : > { %v1620_v11 = vpop.f32.mrf.mxu1 }
 0x27b   : > { %v4622_v13 = vadd.f32 %v1620_v11, %v1291_v9 }
 0x27d   : > { %v3519_v21 = vpack.c.bf16 %v4622_v13, %v4620_v12  ;;  %v1426_v61 = vpop.f32.mrf.mxu2  ;;  %v1755_v50 = vpop.f32.mrf.mxu3 }
 0x27e   : > { %v4629_v37 = vadd.f32 %v1755_v50, %v1426_v61 }
 0x27f   : > { %3731 = vst [vmem:[%s4249_s26 + $0xd0] sm:$0xff] %v3519_v21  }
 0x280   : > { %5067 = vst [vmem:[#allocation24_spill] sm:$0xff] %v4629_v37  ;;  %v3654_v7 = vpack.c.bf16 %v4629_v37, %v4627_v39  ;;  %1468 = vmatmul.bf16.gmra.mxu2 %v3157_v36  ;;  %1797 = vmatmul.bf16.gmra.mxu3 %v3161_v8  ;;  %v3367_v8 = vld [vmem:[%s4182_s6 + $0x3f4] sm:$0xf] }
 0x281   : > { %v1294_v22 = vpop.f32.mrf.mxu0 }
 0x282   : > { %v1623_v27 = vpop.f32.mrf.mxu1  ;;  %3758 = vst [vmem:[%s4249_s26 + $0x1a8] sm:$0xff] %v3654_v7  }
 0x283   : > { %v4638_v15 = vadd.f32 %v1623_v27, %v1294_v22  ;;  %v3164_v22 = vld [vmem:[%s4182_s6 + $0x3f0] sm:$0xf]  ;;  %v3368_v27 = vld [vmem:[%s4182_s6 + $0x3f4] sm:$0xf0] }
 0x285   : > { %v1429_v21 = vpop.f32.mrf.mxu2  ;;  %v1758_v61 = vpop.f32.mrf.mxu3 }
 0x286   : > { %v4645_v1 = vadd.f32 %v1758_v61, %v1429_v21 }
 0x288   : > { %5068 = vst [vmem:[#allocation25_spill] sm:$0xff] %v4645_v1 }
 0x289   : > { %v1296_v9 = vpop.f32.mrf.mxu0 }
 0x28a   : > { %v1625_v11 = vpop.f32.mrf.mxu1 }
 0x28b   : > { %v4640_v18 = vadd.f32 %v1625_v11, %v1296_v9  ;;  %v3165_v9 = vor.u32 %v3368_v27, %v3164_v22  ;;  %v3166_v11 = vld [vmem:[%s4182_s6 + $0x3f8] sm:$0xf0] }
 0x28c   : > { %v3169_v39 = vor.u32 %v3367_v8, %v3166_v11 }
 0x28d   : > { %v3524_v50 = vpack.c.bf16 %v4640_v18, %v4638_v15  ;;  %v1431_v36 = vpop.f32.mrf.mxu2  ;;  %v1760_v4 = vpop.f32.mrf.mxu3 }
 0x28e   : > { %v4647_v7 = vadd.f32 %v1760_v4, %v1431_v36 }
 0x28f   : > { %3732 = vst [vmem:[%s4249_s26 + $0xd8] sm:$0xff] %v3524_v50  }
 0x290   : > { %5069 = vst [vmem:[#allocation26_spill] sm:$0xff] %v4647_v7  ;;  %v3659_v37 = vpack.c.bf16 %v4647_v7, %v4645_v1  ;;  %1473 = vmatmul.bf16.gmra.mxu2 %v3165_v9  ;;  %1802 = vmatmul.bf16.gmra.mxu3 %v3169_v39 }
 0x291   : > { %v1299_v29 = vpop.f32.mrf.mxu0 }
 0x292   : > { %v1628_v34 = vpop.f32.mrf.mxu1  ;;  %3759 = vst [vmem:[%s4249_s26 + $0x1b0] sm:$0xff] %v3659_v37  }
 0x293   : > { %v1629_v50 = vadd.f32 %v1628_v34, %v1299_v29 }
 0x295   : > { %v1434_v36 = vpop.f32.mrf.mxu2  ;;  %v1763_v4 = vpop.f32.mrf.mxu3 }
 0x296   : > { %v4657_v27 = vadd.f32 %v1763_v4, %v1434_v36 }
 0x298   : > { %5070 = vst [vmem:[#allocation27_spill] sm:$0xff] %v4657_v27 }
 0x299   : > { %v1301_v21 = vpop.f32.mrf.mxu0 }
 0x29a   : > { %v1630_v61 = vpop.f32.mrf.mxu1 }
 0x29b   : > { %v1631_v0 = vadd.f32 %v1630_v61, %v1301_v21 }
 0x29d   : > { %v3529_v38 = vpack.c.bf16 %v1631_v0, %v1629_v50  ;;  %v1436_v33 = vpop.f32.mrf.mxu2  ;;  %v1765_v7 = vpop.f32.mrf.mxu3 }
 0x29e   : > { %v4659_v8 = vadd.f32 %v1765_v7, %v1436_v33  ;;  %v2250_v7 = vmul.f32 %v4620_v12, %v4620_v12 }
 0x29f   : > { %3733 = vst [vmem:[%s4249_s26 + $0xe0] sm:$0xff] %v3529_v38  }
 0x2a0   : > { %5071 = vst [vmem:[#allocation28_spill] sm:$0xff] %v4659_v8  ;;  %v3664_v39 = vpack.c.bf16 %v4659_v8, %v4657_v27 }
 0x2a1   : > { %v1304_v57 = vpop.f32.mrf.mxu0 }
 0x2a2   : > { %v1633_v22 = vpop.f32.mrf.mxu1  ;;  %3760 = vst [vmem:[%s4249_s26 + $0x1b8] sm:$0xff] %v3664_v39   ;;  %v2115_v39 = vadd.f32 %v4604_v25, %v4620_v12 }
 0x2a3   : > { %v1634_v34 = vadd.f32 %v1633_v22, %v1304_v57  ;;  %v2251_v57 = vmul.f32 %v4622_v13, %v4622_v13 }
 0x2a5   : > { %v1439_v11 = vpop.f32.mrf.mxu2  ;;  %v1768_v38 = vpop.f32.mrf.mxu3  ;;  %v2256_v58 = vmul.f32 %v1634_v34, %v1634_v34 }
 0x2a6   : > { %v4665_v4 = vadd.f32 %v1768_v38, %v1439_v11  ;;  %v2252_v11 = vmul.f32 %v4638_v15, %v4638_v15 }
 0x2a8   : > { %5072 = vst [vmem:[#allocation29_spill] sm:$0xff] %v4665_v4 }
 0x2a9   : > { %v1306_v37 = vpop.f32.mrf.mxu0 }
 0x2aa   : > { %v1635_v29 = vpop.f32.mrf.mxu1 }
 0x2ab   : > { %v1636_v9 = vadd.f32 %v1635_v29, %v1306_v37  ;;  %v2377_v37 = vadd.f32 %v4607_v30, %v2250_v7  ;;  %v2116_v29 = vadd.f32 %v2115_v39, %v4622_v13  ;;  %v2254_v13 = vmul.f32 %v1629_v50, %v1629_v50 }
 0x2ad   : > { %v3534_v21 = vpack.c.bf16 %v1636_v9, %v1634_v34  ;;  %v1441_v1 = vpop.f32.mrf.mxu2  ;;  %v1770_v33 = vpop.f32.mrf.mxu3  ;;  %v2378_v38 = vadd.f32 %v2377_v37, %v2251_v57  ;;  %v2255_v57 = vmul.f32 %v1631_v0, %v1631_v0 }
 0x2ae   : > { %v4669_v8 = vadd.f32 %v1770_v33, %v1441_v1  ;;  %v2117_v33 = vadd.f32 %v2116_v29, %v4638_v15 }
 0x2af   : > { %3734 = vst [vmem:[%s4249_s26 + $0xe8] sm:$0xff] %v3534_v21   ;;  %v2379_v30 = vadd.f32 %v2378_v38, %v2252_v11 }
 0x2b0   : > { %5073 = vst [vmem:[#allocation30_spill] sm:$0xff] %v4669_v8  ;;  %v3669_v22 = vpack.c.bf16 %v4669_v8, %v4665_v4  ;;  %v2253_v8 = vmul.f32 %v4640_v18, %v4640_v18  ;;  %v2118_v7 = vadd.f32 %v2117_v33, %v4640_v18 }
 0x2b1   : > { %v1309_v61 = vpop.f32.mrf.mxu0 }
 0x2b2   : > { %v1638_v36 = vpop.f32.mrf.mxu1  ;;  %3761 = vst [vmem:[%s4249_s26 + $0x1c0] sm:$0xff] %v3669_v22   ;;  %v2380_v39 = vadd.f32 %v2379_v30, %v2253_v8  ;;  %v2119_v43 = vadd.f32 %v2118_v7, %v1629_v50 }
 0x2b3   : > { %v1639_v4 = vadd.f32 %v1638_v36, %v1309_v61  ;;  %v2257_v36 = vmul.f32 %v1636_v9, %v1636_v9 }
 0x2b4   : > { %v2381_v37 = vadd.f32 %v2380_v39, %v2254_v13  ;;  %v2120_v35 = vadd.f32 %v2119_v43, %v1631_v0 }
 0x2b5   : > { %v1444_v25 = vpop.f32.mrf.mxu2  ;;  %v1773_v12 = vpop.f32.mrf.mxu3  ;;  %v2258_v50 = vmul.f32 %v1639_v4, %v1639_v4 }
 0x2b6   : > { %v2382_v47 = vadd.f32 %v2381_v37, %v2255_v57  ;;  %v2121_v61 = vadd.f32 %v2120_v35, %v1634_v34 }
 0x2b8   : > { %v2122_v8 = vadd.f32 %v2121_v61, %v1636_v9 }
 0x2b9   : > { %v1311_v1 = vpop.f32.mrf.mxu0 }
 0x2ba   : > { %v1640_v21 = vpop.f32.mrf.mxu1  ;;  %v2123_v30 = vadd.f32 %v2122_v8, %v1639_v4 }
 0x2bb   : > { %v1641_v27 = vadd.f32 %v1640_v21, %v1311_v1  ;;  %v4687_v1 = vadd.f32 %v1773_v12, %v1444_v25  ;;  %v2383_v21 = vadd.f32 %v2382_v47, %v2256_v58 }
 0x2bd   : > { %v3539_v22 = vpack.c.bf16 %v1641_v27, %v1639_v4  ;;  %v1446_v11 = vpop.f32.mrf.mxu2  ;;  %v1775_v38 = vpop.f32.mrf.mxu3  ;;  %v2384_v0 = vadd.f32 %v2383_v21, %v2257_v36  ;;  %v2259_v7 = vmul.f32 %v1641_v27, %v1641_v27  ;;  %v2124_v34 = vadd.f32 %v2123_v30, %v1641_v27 }
 0x2be   : > { %v4689_v18 = vadd.f32 %v1775_v38, %v1446_v11  ;;  %v2262_v4 = vmul.f32 %v4297_v48, %v4297_v48  ;;  %v2263_v27 = vmul.f32 %v4299_v52, %v4299_v52  ;;  %v2264_v21 = vmul.f32 %v4313_v16, %v4313_v16 }
 0x2bf   : > { %3735 = vst [vmem:[%s4249_s26 + $0xf0] sm:$0xff] %v3539_v22   ;;  %v2385_v35 = vadd.f32 %v2384_v0, %v2258_v50 }
 0x2c0   : > { %v3674_v43 = vpack.c.bf16 %v4689_v18, %v4687_v1 }
 0x2c1   : > { %v1314_v15 = vpop.f32.mrf.mxu0  ;;  %v2386_v22 = vadd.f32 %v2385_v35, %v2259_v7 }
 0x2c2   : > { %v1643_v29 = vpop.f32.mrf.mxu1  ;;  %3762 = vst [vmem:[%s4249_s26 + $0x1c8] sm:$0xff] %v3674_v43  }
 0x2c3   : > { %v1644_v33 = vadd.f32 %v1643_v29, %v1314_v15 }
 0x2c5   : > { %v2260_v25 = vmul.f32 %v1644_v33, %v1644_v33  ;;  %v2125_v39 = vadd.f32 %v2124_v34, %v1644_v33  ;;  %v1449_v47 = vpop.f32.mrf.mxu2  ;;  %v1778_v58 = vpop.f32.mrf.mxu3  ;;  %v2266_v34 = vmul.f32 %v4329_v49, %v4329_v49 }
 0x2c7   : > { %v2387_v9 = vadd.f32 %v2386_v22, %v2260_v25 }
 0x2c9   : > { %v1316_v12 = vpop.f32.mrf.mxu0 }
 0x2ca   : > { %v1645_v13 = vpop.f32.mrf.mxu1 }
 0x2cb   : > { %v1646_v57 = vadd.f32 %v1645_v13, %v1316_v12  ;;  %v2267_v12 = vmul.f32 %v4331_v54, %v4331_v54 }
 0x2cd   : > { %v3544_v37 = vpack.c.bf16 %v1646_v57, %v1644_v33  ;;  %v2126_v15 = vadd.f32 %v2125_v39, %v1646_v57  ;;  %v2261_v29 = vmul.f32 %v1646_v57, %v1646_v57  ;;  %v4704_v33 = vadd.f32 %v1778_v58, %v1449_v47  ;;  %v1451_v43 = vpop.f32.mrf.mxu2  ;;  %v1780_v0 = vpop.f32.mrf.mxu3 }
 0x2ce   : > { %v4706_v30 = vadd.f32 %v1780_v0, %v1451_v43  ;;  %v2274_v0 = vmul.f32 %v4393_v2, %v4393_v2 }
 0x2cf   : > { %3736 = vst [vmem:[%s4249_s26 + $0xf8] sm:$0xff] %v3544_v37   ;;  %v2127_v61 = vadd.f32 %v2126_v15, %v4297_v48  ;;  %v2388_v36 = vadd.f32 %v2387_v9, %v2261_v29  ;;  %v2265_v48 = vmul.f32 %v4315_v20, %v4315_v20  ;;  %v2269_v9 = vmul.f32 %v4347_v24, %v4347_v24 }
 0x2d0   : > { %v3679_v35 = vpack.c.bf16 %v4706_v30, %v4704_v33  ;;  %v2270_v15 = vmul.f32 %v4361_v56, %v4361_v56 }
 0x2d1   : > { %v2128_v11 = vadd.f32 %v2127_v61, %v4299_v52  ;;  %v2389_v38 = vadd.f32 %v2388_v36, %v2262_v4  ;;  %v2271_v4 = vmul.f32 %v4363_v60, %v4363_v60  ;;  %v2272_v36 = vmul.f32 %v4377_v28, %v4377_v28 }
 0x2d2   : > { %3763 = vst [vmem:[%s4249_s26 + $0x1d0] sm:$0xff] %v3679_v35  }
 0x2d3   : > { %v2129_v8 = vadd.f32 %v2128_v11, %v4313_v16  ;;  %v2390_v50 = vadd.f32 %v2389_v38, %v2263_v27 }
 0x2d5   : > { %v2130_v7 = vadd.f32 %v2129_v8, %v4315_v20  ;;  %v2391_v52 = vadd.f32 %v2390_v50, %v2264_v21  ;;  %v2268_v20 = vmul.f32 %v4345_v19, %v4345_v19  ;;  %v1454_v47 = vpop.f32.mrf.mxu2  ;;  %v1783_v58 = vpop.f32.mrf.mxu3 }
 0x2d6   : > { %v4735_v11 = vadd.f32 %v1783_v58, %v1454_v47  ;;  %v2280_v58 = vmul.f32 %v4441_v62, %v4441_v62 }
 0x2d7   : > { %v2131_v16 = vadd.f32 %v2130_v7, %v4329_v49  ;;  %v2392_v25 = vadd.f32 %v2391_v52, %v2265_v48  ;;  %v2275_v7 = vmul.f32 %v4395_v6, %v4395_v6 }
 0x2d9   : > { %v2132_v13 = vadd.f32 %v2131_v16, %v4331_v54  ;;  %v2393_v22 = vadd.f32 %v2392_v25, %v2266_v34 }
 0x2db   : > { %v2133_v39 = vadd.f32 %v2132_v13, %v4345_v19  ;;  %v2394_v57 = vadd.f32 %v2393_v22, %v2267_v12  ;;  %v2277_v13 = vmul.f32 %v4411_v44, %v4411_v44 }
 0x2dd   : > { %v2134_v49 = vadd.f32 %v2133_v39, %v4347_v24  ;;  %v2395_v37 = vadd.f32 %v2394_v57, %v2268_v20  ;;  %v1456_v38 = vpop.f32.mrf.mxu2  ;;  %v1785_v21 = vpop.f32.mrf.mxu3  ;;  %v2278_v20 = vmul.f32 %v4425_v17, %v4425_v17  ;;  %v2279_v57 = vmul.f32 %v4427_v23, %v4427_v23 }
 0x2de   : > { %v4737_v8 = vadd.f32 %v1785_v21, %v1456_v38 }
 0x2df   : > { %v2135_v54 = vadd.f32 %v2134_v49, %v4361_v56  ;;  %v2396_v29 = vadd.f32 %v2395_v37, %v2269_v9  ;;  %v2273_v56 = vmul.f32 %v4379_v32, %v4379_v32 }
 0x2e0   : > { %v3684_v43 = vpack.c.bf16 %v4737_v8, %v4735_v11 }
 0x2e1   : > { %v2136_v19 = vadd.f32 %v2135_v54, %v4363_v60  ;;  %v2397_v61 = vadd.f32 %v2396_v29, %v2270_v15 }
 0x2e2   : > { %3764 = vst [vmem:[%s4249_s26 + $0x1d8] sm:$0xff] %v3684_v43  }
 0x2e3   : > { %v2137_v27 = vadd.f32 %v2136_v19, %v4377_v28  ;;  %v2398_v24 = vadd.f32 %v2397_v61, %v2271_v4  ;;  %v2282_v19 = vmul.f32 %v4457_v41, %v4457_v41 }
 0x2e5   : > { %v2138_v50 = vadd.f32 %v2137_v27, %v4379_v32  ;;  %v2399_v60 = vadd.f32 %v2398_v24, %v2272_v36  ;;  %v2276_v32 = vmul.f32 %v4409_v40, %v4409_v40  ;;  %v1459_v25 = vpop.f32.mrf.mxu2  ;;  %v1788_v12 = vpop.f32.mrf.mxu3  ;;  %v2283_v36 = vmul.f32 %v4459_v46, %v4459_v46 }
 0x2e6   : > { %v4766_v49 = vadd.f32 %v1788_v12, %v1459_v25 }
 0x2e7   : > { %v2139_v28 = vadd.f32 %v2138_v50, %v4393_v2  ;;  %v2400_v48 = vadd.f32 %v2399_v60, %v2273_v56  ;;  %v2285_v60 = vmul.f32 %v4475_v31, %v4475_v31 }
 0x2e9   : > { %v2140_v52 = vadd.f32 %v2139_v28, %v4395_v6  ;;  %v2401_v35 = vadd.f32 %v2400_v48, %v2274_v0  ;;  %v2286_v0 = vmul.f32 %v4489_v10, %v4489_v10  ;;  %v2287_v48 = vmul.f32 %v4491_v14, %v4491_v14 }
 0x2eb   : > { %v2141_v34 = vadd.f32 %v2140_v52, %v4409_v40  ;;  %v2402_v16 = vadd.f32 %v2401_v35, %v2275_v7  ;;  %v2288_v52 = vmul.f32 %v4505_v63, %v4505_v63 }
 0x2ed   : > { %v2142_v2 = vadd.f32 %v2141_v34, %v4411_v44  ;;  %v2403_v22 = vadd.f32 %v2402_v16, %v2276_v32  ;;  %v1461_v37 = vpop.f32.mrf.mxu2  ;;  %v1790_v15 = vpop.f32.mrf.mxu3 }
 0x2ee   : > { %v4768_v54 = vadd.f32 %v1790_v15, %v1461_v37  ;;  %v2294_v37 = vmul.f32 %v4553_v42, %v4553_v42 }
 0x2ef   : > { %v2143_v6 = vadd.f32 %v2142_v2, %v4425_v17  ;;  %v2404_v39 = vadd.f32 %v2403_v22, %v2277_v13  ;;  %v2281_v17 = vmul.f32 %v4443_v3, %v4443_v3  ;;  %v2290_v2 = vmul.f32 %v4521_v53, %v4521_v53 }
 0x2f0   : > { %v3689_v4 = vpack.c.bf16 %v4768_v54, %v4766_v49 }
 0x2f1   : > { %v2144_v40 = vadd.f32 %v2143_v6, %v4427_v23  ;;  %v2405_v47 = vadd.f32 %v2404_v39, %v2278_v20  ;;  %v2291_v20 = vmul.f32 %v4523_v59, %v4523_v59 }
 0x2f2   : > { %3765 = vst [vmem:[%s4249_s26 + $0x1e0] sm:$0xff] %v3689_v4  }
 0x2f3   : > { %v2145_v9 = vadd.f32 %v2144_v40, %v4441_v62  ;;  %v2406_v44 = vadd.f32 %v2405_v47, %v2279_v57 }
 0x2f5   : > { %v2146_v29 = vadd.f32 %v2145_v9, %v4443_v3  ;;  %v2407_v23 = vadd.f32 %v2406_v44, %v2280_v58  ;;  %v2284_v3 = vmul.f32 %v4473_v26, %v4473_v26  ;;  %v1464_v56 = vpop.f32.mrf.mxu2  ;;  %v1793_v50 = vpop.f32.mrf.mxu3  ;;  %v2293_v9 = vmul.f32 %v4539_v55, %v4539_v55 }
 0x2f6   : > { %v4797_v32 = vadd.f32 %v1793_v50, %v1464_v56 }
 0x2f7   : > { %v2147_v62 = vadd.f32 %v2146_v29, %v4457_v41  ;;  %v2408_v61 = vadd.f32 %v2407_v23, %v2281_v17  ;;  %v2295_v17 = vmul.f32 %v4555_v51, %v4555_v51  ;;  %v5074_v23 = vld [vmem:[#allocation15_spill] sm:$0xff] }
 0x2f8   : > { %v2296_v4 = vmul.f32 %v5074_v23, %v5074_v23 }
 0x2f9   : > { %v2148_v27 = vadd.f32 %v2147_v62, %v4459_v46  ;;  %v2409_v24 = vadd.f32 %v2408_v61, %v2282_v19 }
 0x2fb   : > { %v2149_v38 = vadd.f32 %v2148_v27, %v4473_v26  ;;  %v2410_v21 = vadd.f32 %v2409_v24, %v2283_v36 }
 0x2fd   : > { %v2150_v41 = vadd.f32 %v2149_v38, %v4475_v31  ;;  %v2411_v43 = vadd.f32 %v2410_v21, %v2284_v3  ;;  %v1466_v34 = vpop.f32.mrf.mxu2  ;;  %v1795_v16 = vpop.f32.mrf.mxu3  ;;  %v5076_v21 = vld [vmem:[#allocation17_spill] sm:$0xff] }
 0x2fe   : > { %v4799_v25 = vadd.f32 %v1795_v16, %v1466_v34  ;;  %v2298_v56 = vmul.f32 %v5076_v21, %v5076_v21 }
 0x2ff   : > { %v2412_v28 = vadd.f32 %v2411_v43, %v2285_v60  ;;  %v2151_v46 = vadd.f32 %v2150_v41, %v4489_v10  ;;  %v2289_v10 = vmul.f32 %v4507_v5, %v4507_v5  ;;  %v5077_v41 = vld [vmem:[#allocation18_spill] sm:$0xff] }
 0x300   : > { %v3694_v13 = vpack.c.bf16 %v4799_v25, %v4797_v32  ;;  %v2299_v43 = vmul.f32 %v5077_v41, %v5077_v41 }
 0x301   : > { %v2152_v26 = vadd.f32 %v2151_v46, %v4491_v14  ;;  %v2413_v7 = vadd.f32 %v2412_v28, %v2286_v0  ;;  %v5078_v46 = vld [vmem:[#allocation19_spill] sm:$0xff] }
 0x302   : > { %3766 = vst [vmem:[%s4249_s26 + $0x1e8] sm:$0xff] %v3694_v13  }
 0x303   : > { %v2153_v35 = vadd.f32 %v2152_v26, %v4505_v63  ;;  %v2414_v31 = vadd.f32 %v2413_v7, %v2287_v48  ;;  %v2300_v48 = vmul.f32 %v5078_v46, %v5078_v46 }
 0x305   : > { %v2154_v12 = vadd.f32 %v2153_v35, %v4507_v5  ;;  %v2415_v14 = vadd.f32 %v2414_v31, %v2288_v52  ;;  %v2292_v5 = vmul.f32 %v4537_v45, %v4537_v45  ;;  %v1469_v47 = vpop.f32.mrf.mxu2  ;;  %v1798_v58 = vpop.f32.mrf.mxu3  ;;  %v5079_v31 = vld [vmem:[#allocation20_spill] sm:$0xff] }
 0x306   : > { %v4828_v62 = vadd.f32 %v1798_v58, %v1469_v47  ;;  %v2301_v34 = vmul.f32 %v5079_v31, %v5079_v31 }
 0x307   : > { %v2155_v63 = vadd.f32 %v2154_v12, %v4521_v53  ;;  %v2416_v22 = vadd.f32 %v2415_v14, %v2289_v10  ;;  %v5080_v12 = vld [vmem:[#allocation21_spill] sm:$0xff] }
 0x308   : > { %v2302_v14 = vmul.f32 %v5080_v12, %v5080_v12 }
 0x309   : > { %v2156_v6 = vadd.f32 %v2155_v63, %v4523_v59  ;;  %v2417_v39 = vadd.f32 %v2416_v22, %v2290_v2  ;;  %v5081_v63 = vld [vmem:[#allocation22_spill] sm:$0xff] }
 0x30a   : > { %v2303_v22 = vmul.f32 %v5081_v63, %v5081_v63 }
 0x30b   : > { %v2157_v57 = vadd.f32 %v2156_v6, %v4537_v45  ;;  %v2418_v40 = vadd.f32 %v2417_v39, %v2291_v20  ;;  %v5082_v39 = vld [vmem:[#allocation23_spill] sm:$0xff] }
 0x30d   : > { %v2158_v53 = vadd.f32 %v2157_v57, %v4539_v55  ;;  %v2419_v44 = vadd.f32 %v2418_v40, %v2292_v5  ;;  %v1471_v61 = vpop.f32.mrf.mxu2  ;;  %v1800_v36 = vpop.f32.mrf.mxu3  ;;  %v2304_v5 = vmul.f32 %v5082_v39, %v5082_v39 }
 0x30e   : > { %v4830_v27 = vadd.f32 %v1800_v36, %v1471_v61 }
 0x30f   : > { %v2159_v59 = vadd.f32 %v2158_v53, %v4553_v42  ;;  %v2420_v15 = vadd.f32 %v2419_v44, %v2293_v9  ;;  %v5075_v42 = vld [vmem:[#allocation16_spill] sm:$0xff] }
 0x310   : > { %v2297_v24 = vmul.f32 %v5075_v42, %v5075_v42  ;;  %v3699_v38 = vpack.c.bf16 %v4830_v27, %v4828_v62  ;;  %v5083_v44 = vld [vmem:[#allocation24_spill] sm:$0xff] }
 0x311   : > { %v2160_v45 = vadd.f32 %v2159_v59, %v4555_v51  ;;  %v2421_v29 = vadd.f32 %v2420_v15, %v2294_v37  ;;  %v2305_v37 = vmul.f32 %v5083_v44, %v5083_v44 }
 0x312   : > { %3767 = vst [vmem:[%s4249_s26 + $0x1f0] sm:$0xff] %v3699_v38  }
 0x313   : > { %v2161_v19 = vadd.f32 %v2160_v45, %v5074_v23  ;;  %v2422_v55 = vadd.f32 %v2421_v29, %v2295_v17  ;;  %v5084_v45 = vld [vmem:[#allocation25_spill] sm:$0xff] }
 0x314   : > { %v2306_v29 = vmul.f32 %v5084_v45, %v5084_v45 }
 0x315   : > { %v2162_v51 = vadd.f32 %v2161_v19, %v5075_v42  ;;  %v2423_v3 = vadd.f32 %v2422_v55, %v2296_v4  ;;  %v1474_v52 = vpop.f32.mrf.mxu2  ;;  %v1803_v35 = vpop.f32.mrf.mxu3  ;;  %v5085_v19 = vld [vmem:[#allocation26_spill] sm:$0xff] }
 0x316   : > { %v4864_v47 = vadd.f32 %v1803_v35, %v1474_v52  ;;  %v2307_v55 = vmul.f32 %v5085_v19, %v5085_v19 }
 0x317   : > { %v2163_v50 = vadd.f32 %v2162_v51, %v5076_v21  ;;  %v2424_v60 = vadd.f32 %v2423_v3, %v2297_v24 }
 0x319   : > { %v2164_v0 = vadd.f32 %v2163_v50, %v5077_v41  ;;  %v2425_v28 = vadd.f32 %v2424_v60, %v2298_v56 }
 0x31b   : > { %v2165_v26 = vadd.f32 %v2164_v0, %v5078_v46  ;;  %v2426_v7 = vadd.f32 %v2425_v28, %v2299_v43 }
 0x31d   : > { %v2166_v16 = vadd.f32 %v2165_v26, %v5079_v31  ;;  %v2427_v10 = vadd.f32 %v2426_v7, %v2300_v48  ;;  %v1476_v58 = vpop.f32.mrf.mxu2  ;;  %v1805_v9 = vpop.f32.mrf.mxu3 }
 0x31e   : > { %v4866_v53 = vadd.f32 %v1805_v9, %v1476_v58 }
 0x31f   : > { %v2167_v13 = vadd.f32 %v2166_v16, %v5080_v12  ;;  %v2428_v2 = vadd.f32 %v2427_v10, %v2301_v34 }
 0x320   : > { %v3704_v17 = vpack.c.bf16 %v4866_v53, %v4864_v47 }
 0x321   : > { %v2168_v20 = vadd.f32 %v2167_v13, %v5081_v63  ;;  %v2429_v6 = vadd.f32 %v2428_v2, %v2302_v14 }
 0x322   : > { %3768 = vst [vmem:[%s4249_s26 + $0x1f8] sm:$0xff] %v3704_v17  }
 0x323   : > { %v2169_v57 = vadd.f32 %v2168_v20, %v5082_v39  ;;  %v2430_v40 = vadd.f32 %v2429_v6, %v2303_v22 }
 0x325   : > { %v2170_v59 = vadd.f32 %v2169_v57, %v5083_v44  ;;  %v2431_v15 = vadd.f32 %v2430_v40, %v2304_v5 }
 0x327   : > { %v2171_v23 = vadd.f32 %v2170_v59, %v5084_v45  ;;  %v2432_v4 = vadd.f32 %v2431_v15, %v2305_v37 }
 0x329   : > { %v2172_v61 = vadd.f32 %v2171_v23, %v5085_v19  ;;  %v2433_v36 = vadd.f32 %v2432_v4, %v2306_v29 }
 0x32a   : > { %3945 = shalt.err (!%p3942_p10)
}
 0x32b   : > { %s4055_s26 = smov 64   ;;  %s4056_s24 = smov 4   ;;  %v5086_v42 = vld [vmem:[#allocation27_spill] sm:$0xff]  ;;  %v2434_v3 = vadd.f32 %v2433_v36, %v2307_v55  ;;  %v5087_v38 = vld [vmem:[#allocation28_spill] sm:$0xff]  ;;  %v5088_v60 = vld [vmem:[#allocation29_spill] sm:$0xff]  ;;  %v2312_v35 = vmul.f32 %v4687_v1, %v4687_v1  ;;  %v2313_v16 = vmul.f32 %v4689_v18, %v4689_v18  ;;  %v2314_v14 = vmul.f32 %v4704_v33, %v4704_v33 }
 0x32c   : > { %3791 = dma.vmem_to_hbm [thread:$0]  (%p4150_p5), %s4871_s11, 8192, %s2484_s12, %s2461_s13, %s4055_s26, %s4055_s26, %s4056_s24   ;;  %v2308_v24 = vmul.f32 %v5086_v42, %v5086_v42  ;;  %v2173_v51 = vadd.f32 %v2172_v61, %v5086_v42  ;;  %v2309_v21 = vmul.f32 %v5087_v38, %v5087_v38  ;;  %v2310_v43 = vmul.f32 %v5088_v60, %v5088_v60  ;;  %v5089_v46 = vld [vmem:[#allocation30_spill] sm:$0xff] }
 0x32d   : > { %v2311_v26 = vmul.f32 %v5089_v46, %v5089_v46  ;;  %v2315_v63 = vmul.f32 %v4706_v30, %v4706_v30  ;;  %v2316_v20 = vmul.f32 %v4735_v11, %v4735_v11  ;;  %v2317_v39 = vmul.f32 %v4737_v8, %v4737_v8  ;;  %s2495_s30 = scalar_lea.hbm %s5019_s3, %s4103_s19  ;;  %s2465_s11 = sand.u32 1, %s4103_s19  }
 0x32e   : > { %v2174_v56 = vadd.f32 %v2173_v51, %v5087_v38  ;;  %v2435_v50 = vadd.f32 %v2434_v3, %v2308_v24  ;;  %v2318_v57 = vmul.f32 %v4766_v49, %v4766_v49  ;;  %v2319_v58 = vmul.f32 %v4768_v54, %v4768_v54  ;;  %s2508_s14 = scalar_lea.hbm %s5020_s4, %s4103_s19  ;;  %s245_s10 = scalar_lea.vmem [#allocation8], %s4178_s25 }
 0x32f   : > { %v2320_v44 = vmul.f32 %v4797_v32, %v4797_v32  ;;  %v2321_v59 = vmul.f32 %v4799_v25, %v4799_v25  ;;  %v2322_v17 = vmul.f32 %v4828_v62, %v4828_v62  ;;  %s4958_s23 = sshll.u32 %s245_s10, 4  ;;  %s4960_s7 = sshll.u32 %s2495_s30, 4  ;;  %s2498_s23 = int_to_ptr.vmem [resolvable:$true] %s4958_s23  ;;  %s2500_s7 = int_to_ptr.hbm [resolvable:$true] %s4960_s7 }
 0x330   : > { %v2175_v41 = vadd.f32 %v2174_v56, %v5088_v60  ;;  %v2436_v0 = vadd.f32 %v2435_v50, %v2309_v21  ;;  %s251_s5 = scalar_lea.vmem [#allocation10], %s4178_s25  ;;  %s4965_s21 = sshll.u32 %s2508_s14, 4  ;;  %s2513_s21 = int_to_ptr.hbm [resolvable:$true] %s4965_s21 }
 0x331   : > { %s4963_s6 = sshll.u32 %s251_s5, 4  ;;  %s2466_s19 = scalar_lea.sflag [#allocation9], %s2465_s11  ;;  %s2511_s6 = int_to_ptr.vmem [resolvable:$true] %s4963_s6 }
 0x332   : > { %v2437_v28 = vadd.f32 %v2436_v0, %v2310_v43  ;;  %v2176_v48 = vadd.f32 %v2175_v41, %v5089_v46  ;;  %s3960_s26 = sshra.s32 %s2500_s7, 4  ;;  %s3966_s28 = scalar_lea.hbm %s5019_s3, 4  ;;  %s3961_s26 = int_to_ptr.hbm [resolvable:$true] %s3960_s26 }
 0x333   : > { %s3962_s24 = scalar_lea.hbm %s3961_s26, 1  ;;  %p3967_p0 = scmp.lt.s32.totalorder %s3961_s26, %s5019_s3 }
 0x334   : > { %v2438_v7 = vadd.f32 %v2437_v28, %v2311_v26  ;;  %v2177_v52 = vadd.f32 %v2176_v48, %v4687_v1  ;;  %p3963_p11 = scmp.ne.s32.totalorder %s3961_s26, %s3962_s24  ;;  %p3968_p3 = scmp.lt.s32.totalorder %s3966_s28, %s3962_s24 }
 0x336   : > { %v2439_v31 = vadd.f32 %v2438_v7, %v2312_v35  ;;  %v2178_v34 = vadd.f32 %v2177_v52, %v4689_v18  ;;  %p3964_p12 = pnand %p3963_p11, %p4150_p5  ;;  %p3969_p1 = por %p3968_p3, %p3967_p0 }
 0x338   : > { %v2440_v10 = vadd.f32 %v2439_v31, %v2313_v16  ;;  %v2179_v12 = vadd.f32 %v2178_v34, %v4704_v33  ;;  %p3965_p13 = pneg %p3964_p12 }
 0x33a   : > { %v2441_v13 = vadd.f32 %v2440_v10, %v2314_v14  ;;  %v2180_v2 = vadd.f32 %v2179_v12, %v4706_v30  ;;  %p3970_p4 = pnand %p3969_p1, %p3965_p13 }
 0x33c   : > { %v2442_v22 = vadd.f32 %v2441_v13, %v2315_v63  ;;  %v2181_v1 = vadd.f32 %v2180_v2, %v4735_v11 }
 0x33e   : > { %v2443_v6 = vadd.f32 %v2442_v22, %v2316_v20  ;;  %v2182_v18 = vadd.f32 %v2181_v1, %v4737_v8 }
 0x340   : > { %v2444_v5 = vadd.f32 %v2443_v6, %v2317_v39  ;;  %v2183_v33 = vadd.f32 %v2182_v18, %v4766_v49 }
 0x342   : > { %v2445_v40 = vadd.f32 %v2444_v5, %v2318_v57  ;;  %v2184_v30 = vadd.f32 %v2183_v33, %v4768_v54 }
 0x344   : > { %v2446_v9 = vadd.f32 %v2445_v40, %v2319_v58  ;;  %v2185_v11 = vadd.f32 %v2184_v30, %v4797_v32  ;;  %v2323_v32 = vmul.f32 %v4830_v27, %v4830_v27 }
 0x346   : > { %v2447_v37 = vadd.f32 %v2446_v9, %v2320_v44  ;;  %v2186_v8 = vadd.f32 %v2185_v11, %v4799_v25  ;;  %v2324_v25 = vmul.f32 %v4864_v47, %v4864_v47 }
 0x348   : > { %v2448_v15 = vadd.f32 %v2447_v37, %v2321_v59  ;;  %v2187_v49 = vadd.f32 %v2186_v8, %v4828_v62  ;;  %v2325_v62 = vmul.f32 %v4866_v53, %v4866_v53 }
 0x34a   : > { %v2449_v54 = vadd.f32 %v2448_v15, %v2322_v17  ;;  %v2188_v45 = vadd.f32 %v2187_v49, %v4830_v27 }
 0x34c   : > { %v2450_v29 = vadd.f32 %v2449_v54, %v2323_v32  ;;  %v2189_v23 = vadd.f32 %v2188_v45, %v4864_v47 }
 0x34e   : > { %v2451_v4 = vadd.f32 %v2450_v29, %v2324_v25  ;;  %v2190_v19 = vadd.f32 %v2189_v23, %v4866_v53 }
 0x350   : > { %v2191_v55 = vrot.slane %v2190_v19, 4  ;;  %v2452_v61 = vadd.f32 %v2451_v4, %v2325_v62 }
 0x352   : > { %v2192_v36 = vadd.f32 %v2191_v55, %v2190_v19  ;;  %v2453_v42 = vrot.slane %v2452_v61, 4 }
 0x354   : > { %v2193_v27 = vrot.slane %v2192_v36, 2  ;;  %v2454_v24 = vadd.f32 %v2453_v42, %v2452_v61 }
 0x356   : > { %v2194_v51 = vadd.f32 %v2193_v27, %v2192_v36  ;;  %v2455_v47 = vrot.slane %v2454_v24, 2 }
 0x358   : > { %v2195_v53 = vrot.slane %v2194_v51, 1  ;;  %v2456_v3 = vadd.f32 %v2455_v47, %v2454_v24 }
 0x35a   : > { %v2457_v38 = vrot.slane %v2456_v3, 1  ;;  %v2196_v21 = vadd.f32 %v2195_v53, %v2194_v51 }
 0x35c   : > { %2197 = vst [vmem:[%s245_s10] sm:$0x1] %v2196_v21  ;;  %v2458_v56 = vadd.f32 %v2457_v38, %v2456_v3 }
 0x35d   : > { %3973 = shalt.err (!%p3970_p4)
}
 0x35e   : > { %3792 = dma.vmem_to_hbm [thread:$0]  (%p4150_p5), %s2498_s23, 16, %s2500_s7, %s2466_s19   ;;  %2459 = vst [vmem:[%s251_s5] sm:$0x1] %v2458_v56 }
 0x35f   : > { %s3988_s11 = sshra.s32 %s2513_s21, 4  ;;  %s3994_s26 = scalar_lea.hbm %s5020_s4, 4  ;;  %s3989_s11 = int_to_ptr.hbm [resolvable:$true] %s3988_s11 }
 0x360   : > { %s3990_s13 = scalar_lea.hbm %s3989_s11, 1  ;;  %p3995_p9 = scmp.lt.s32.totalorder %s3989_s11, %s5020_s4 }
 0x361   : > { %p3991_p8 = scmp.ne.s32.totalorder %s3989_s11, %s3990_s13  ;;  %p3996_p10 = scmp.lt.s32.totalorder %s3994_s26, %s3990_s13 }
 0x363   : > { %p3992_p7 = pnand %p3991_p8, %p4150_p5  ;;  %p3997_p11 = por %p3996_p10, %p3995_p9 }
 0x365   : > { %p3993_p2 = pneg %p3992_p7 }
 0x367   : > { %p3998_p12 = pnand %p3997_p11, %p3993_p2 }
 0x369   : > { %4001 = shalt.err (!%p3998_p12)
}
 0x36a   : > { %3793 = dma.vmem_to_hbm [thread:$0]  (%p4150_p5), %s2511_s6, 16, %s2513_s21, %s2466_s19  }
 0x36b PF: > { %p3818_p13 = scmp.ge.s32.totalorder %s4048_s18, 2  ;;  %s2524_s23 = sand.u32 1, %s4036_s15  }
 0x36c   : > { %s2525_s7 = scalar_lea.sflag [#allocation4], %s2524_s23 }
 0x36d   : > { %p3806_p0 = pnand %p3818_p13, %p4119_p6 }
 0x36f   : > { %p3807_p3 = pneg %p3806_p0 }
 0x371   : > { %4027 = dma.done.wait (%p3807_p3), %s2525_s7, 8192  }
 0x372   : > { %4029 = vsyncadd (%p3807_p3), %s2525_s7, 4294959104  ;;  %s2534_s9 = sand.u32 1, %s2646_s20  }
 0x373   : > { %s2535_s5 = scalar_lea.sflag [#allocation9], %s2534_s9 }
 0x374   : > { %4031 = dma.done.wait (%p3807_p3), %s2535_s5, 32  }
 0x375   : > { %4033 = vsyncadd (%p3807_p3), %s2535_s5, 4294967264  ;;  %p22_p5 = scmp.ge.s32.totalorder %s4136_s29, 6   ;;  %s5090_s15 = smov %s4040_s16 }
 0x376   : > { %s5091_s16 = smov %s4044_s17  ;;  %s5092_s17 = smov %s4146_s8 }
 0x377   : > { %s5093_s18 = smov %s4136_s29  ;;  %24 = sbr.rel (!%p22_p5) target bundleno = 8 (0x8), region = 109 }
 0x37c   :  { %2549 = vsyncpa [#allocation3], 1 }
 0x37d   :  { %2551 = vsyncpa [#allocation3 + $0x1], 1 }
 0x37e   :  { %2552 = vsyncpa [#allocation6], 1 }
 0x37f   :  { %2553 = vsyncpa [#allocation4], 1 }
 0x380   :  { %2555 = vsyncpa [#allocation4 + $0x1], 1 }
 0x381   :  { %2556 = vsyncpa [#allocation9], 1 }
 0x382   :  { %2558 = vsyncpa [#allocation9 + $0x1], 1 }

</bundles_post_ra>
